<compile_context>
chip_gen: v7x
topology: tpu7x:2x2x1
jax: 0.10.0
libtpu: 0.0.40
codegen_flags: <defaults>
</compile_context>

<pallas_src>
import jax
import jax.numpy as jnp
from jax import lax
from jax.experimental import pallas as pl
from jax.experimental.pallas import tpu as pltpu


_HALO_ROWS = 8  # sublane-granular halo block (f32 tiling is (8, 128))


def _propagate_kernel(pa_ref, pa_up_ref, pa_dn_ref, pb_ref, t_ref,
                      pmin_ref, dir_ref, score_ref):
    i = pl.program_id(0)
    n = pl.num_programs(0)

    A = pa_ref[...]                       # (T, W) f32: P_A_local tile
    T, W = A.shape
    one_m_pb = 1.0 - pb_ref[...]          # (T, W)

    row = lax.broadcasted_iota(jnp.int32, (T, W), 0)
    col = lax.broadcasted_iota(jnp.int32, (T, W), 1)

    # Halo rows with the *global* edge clamp baked in:
    #   above == P_A[max(i*T - 1, 0)]      (up halo covers rows [0,8) on tile 0)
    #   below == P_A[min((i+1)*T, H - 1)]  (dn halo covers last 8 rows on last tile)
    up_off = jnp.where(i > 0, _HALO_ROWS - 1, 0)
    dn_off = jnp.where(i < n - 1, 0, _HALO_ROWS - 1)
    above = pa_up_ref[pl.ds(up_off, 1), :]   # (1, W)
    below = pa_dn_ref[pl.ds(dn_off, 1), :]   # (1, W)

    def candidate(shifted):
        # P_B_d = 1 - (1 - shift_d(P_A)) * (1 - p_B)
        return 1.0 - (1.0 - shifted) * one_m_pb

    # direction 0: identity
    m = candidate(A)
    idx = jnp.zeros((T, W), jnp.int32)

    def fold(m, idx, shifted, d):
        p = candidate(shifted)
        take = p < m                      # strict '<': first-occurrence ties, like argmin
        return jnp.where(take, p, m), jnp.where(take, d, idx)

    # direction 1: out[:, j] = A[:, j+1], last column clamped
    m, idx = fold(m, idx,
                  jnp.where(col == W - 1, A, pltpu.roll(A, shift=W - 1, axis=1)), 1)
    # direction 2: out[:, j] = A[:, j-1], first column clamped
    m, idx = fold(m, idx,
                  jnp.where(col == 0, A, pltpu.roll(A, shift=1, axis=1)), 2)
    # direction 3: out[r, :] = A[r+1, :], bottom row from halo (global clamp inside)
    m, idx = fold(m, idx,
                  jnp.where(row == T - 1, below, pltpu.roll(A, shift=T - 1, axis=0)), 3)
    # direction 4: out[r, :] = A[r-1, :], top row from halo (global clamp inside)
    m, idx = fold(m, idx,
                  jnp.where(row == 0, above, pltpu.roll(A, shift=1, axis=0)), 4)

    t = t_ref[0, 0]
    pmin_ref[...] = m
    dir_ref[...] = idx.astype(jnp.int8)   # values 0..4 -> 1 B/elem output stream
    score_ref[...] = 2.0 * t * (1.0 - m) + 1440.0 * m


def _round_up(x, m):
    return ((x + m - 1) // m) * m


def _pick_tile_h(Hp, Wp):
    """Largest multiple-of-32 divisor of Hp with (tile, Wp) f32 plane ~<= 2 MiB,
    so double-buffered ins/outs + intermediates fit v7x's 64 MiB VMEM (and
    comfortably inside v5e/v6e)."""
    target_elems = 512 * 1024            # ~2 MiB per f32 plane block
    budget = max(32, min(512, (target_elems // Wp) // 32 * 32))
    for cand in range(budget, 31, -32):
        if Hp % cand == 0:
            return cand
    return 32


def propagator_forward_planes(p_a, p_b, t, *, tile_h=None):
    """Fast path: P_A_local and p_B as separate contiguous (H, W) planes
    (keep them split upstream to avoid an extra HBM pass over packed A).

    Returns (P_B_reduce (H,W) f32, direction_map (H,W) int8 in [0,4],
             B_score (H,W) f32)."""
    H, W = p_a.shape
    Hp = _round_up(H, 32)                # int8 output tiling + 8-row halos
    Wp = _round_up(W, 128)               # lane-dense (unmasked) stores

    pa = p_a.astype(jnp.float32)
    pb = p_b.astype(jnp.float32)
    if (Hp, Wp) != (H, W):
        # Edge-replication padding preserves the edge-clamp shift semantics at
        # the (padded) high boundaries; padded rows/cols are sliced off below.
        pad = ((0, Hp - H), (0, Wp - W))
        pa = jnp.pad(pa, pad, mode="edge")
        pb = jnp.pad(pb, pad, mode="edge")

    if tile_h is None:
        tile_h = _pick_tile_h(Hp, Wp)
    assert tile_h % 32 == 0 and Hp % tile_h == 0, (tile_h, Hp)
    n_tiles = Hp // tile_h
    hb = tile_h // _HALO_ROWS            # halo-block index stride per tile
    n_halo_blocks = Hp // _HALO_ROWS

    t_arr = jnp.reshape(jnp.asarray(t, jnp.float32), (1, 1))

    plane_spec = pl.BlockSpec((tile_h, Wp), lambda i: (i, 0))
    up_spec = pl.BlockSpec((_HALO_ROWS, Wp),
                           lambda i: (jnp.maximum(i * hb - 1, 0), 0))
    dn_spec = pl.BlockSpec((_HALO_ROWS, Wp),
                           lambda i: (jnp.minimum((i + 1) * hb, n_halo_blocks - 1), 0))

    pmin, dmap, score = pl.pallas_call(
        _propagate_kernel,
        grid=(n_tiles,),
        in_specs=[
            plane_spec,                                        # P_A tile
            up_spec,                                           # P_A halo above
            dn_spec,                                           # P_A halo below
            plane_spec,                                        # p_B tile
            pl.BlockSpec(memory_space=pltpu.MemorySpace.SMEM),  # t scalar
        ],
        out_specs=(
            pl.BlockSpec((tile_h, Wp), lambda i: (i, 0)),
            pl.BlockSpec((tile_h, Wp), lambda i: (i, 0)),
            pl.BlockSpec((tile_h, Wp), lambda i: (i, 0)),
        ),
        out_shape=(
            jax.ShapeDtypeStruct((Hp, Wp), jnp.float32),
            jax.ShapeDtypeStruct((Hp, Wp), jnp.int8),
            jax.ShapeDtypeStruct((Hp, Wp), jnp.float32),
        ),
        compiler_params=pltpu.CompilerParams(
            dimension_semantics=("parallel",),        # megacore-shardable on v7x
            vmem_limit_bytes=48 * 1024 * 1024,        # > v5e 16 MiB default, < v7x 64 MiB
        ),
    )(pa, pa, pa, pb, t_arr)

    if (Hp, Wp) != (H, W):
        pmin, dmap, score = pmin[:H, :W], dmap[:H, :W], score[:H, :W]
    return pmin, dmap, score


def propagator_forward(A, t, *, tile_h=None):
    """Drop-in equivalent of Propagator.forward: A is (H, W, 2) channels-last.

    Note: slicing the interleaved channel dim costs one extra HBM pass over A;
    prefer propagator_forward_planes(...) with the planes kept separate upstream.
    """
    # TODO(synk): de-interleave A's channel dim inside the kernel (lane-strided
    # load of an (H, 2W) view) to remove this extra pass for packed-layout callers.
    return propagator_forward_planes(A[:, :, 0], A[:, :, 1], t, tile_h=tile_h)


def _reference(A, t):
    """Pure-JAX reference mirroring the PyTorch forward."""
    H, W, _ = A.shape
    pa = A[:, :, 0]
    pb = A[:, :, 1]

    def adjust(x, d):
        if d == 0:
            return x
        if d == 1:
            return jnp.concatenate([x[:, 1:], x[:, W - 1:W]], axis=1)
        if d == 2:
            return jnp.concatenate([x[:, 0:1], x[:, :W - 1]], axis=1)
        if d == 3:
            return jnp.concatenate([x[1:, :], x[H - 1:H, :]], axis=0)
        return jnp.concatenate([x[0:1, :], x[:H - 1, :]], axis=0)

    P_B = jnp.stack(
        [1.0 - (1.0 - adjust(pa, i)) * (1.0 - pb) for i in range(5)], axis=2)
    P_B_reduce = jnp.min(P_B, axis=2)
    direction_map = jnp.argmin(P_B, axis=2).astype(jnp.int32)
    B_score = 2.0 * t * (1.0 - P_B_reduce) + 1440.0 * P_B_reduce
    return P_B_reduce, direction_map, B_score


if __name__ == "__main__":
    key = jax.random.PRNGKey(0)
    k1, k2 = jax.random.split(key)
    t = 3.0

    # Case 1: aligned shape, forced small tile -> 3-tile grid exercising the
    # H-halo handling and the pipelined path.
    A1 = jax.random.uniform(k1, (96, 256, 2), dtype=jnp.float32)
    p1, d1, s1 = jax.block_until_ready(propagator_forward(A1, t, tile_h=32))
    p1r, d1r, s1r = _reference(A1, t)
    assert jnp.allclose(p1, p1r, atol=1e-6, rtol=1e-6)
    assert jnp.array_equal(d1.astype(jnp.int32), d1r)
    assert jnp.allclose(s1, s1r, atol=1e-4, rtol=1e-6)

    # Case 2: unaligned shape -> edge-replication padding + auto tile selection.
    A2 = jax.random.uniform(k2, (50, 200, 2), dtype=jnp.float32)
    p2, d2, s2 = jax.block_until_ready(propagator_forward(A2, t))
    p2r, d2r, s2r = _reference(A2, t)
    assert jnp.allclose(p2, p2r, atol=1e-6, rtol=1e-6)
    assert jnp.array_equal(d2.astype(jnp.int32), d2r)
    assert jnp.allclose(s2, s2r, atol=1e-4, rtol=1e-6)

    print("KERNEL_OK")
</pallas_src>

<mosaic_0001>
module attributes {stable_mosaic.version = 11 : i64} {
  func.func @_propagate_kernel(%arg0: i32, %arg1: memref<32x256xf32, #tpu.memory_space<vmem>>, %arg2: memref<8x256xf32, #tpu.memory_space<vmem>>, %arg3: memref<8x256xf32, #tpu.memory_space<vmem>>, %arg4: memref<32x256xf32, #tpu.memory_space<vmem>>, %arg5: memref<1x1xf32, #tpu.memory_space<smem>>, %arg6: memref<32x256xf32, #tpu.memory_space<vmem>>, %arg7: memref<32x256xi8, #tpu.memory_space<vmem>>, %arg8: memref<32x256xf32, #tpu.memory_space<vmem>>) attributes {dimension_semantics = [#tpu.dimension_semantics<parallel>], iteration_bounds = array<i64: 3>, scalar_prefetch = 0 : i64, scratch_operands = 0 : i64, tpu.core_type = #tpu.core_type<tc>, window_params = [{transform_indices = @transform_0, window_bounds = array<i64: 32, 256>}, {transform_indices = @transform_1, window_bounds = array<i64: 8, 256>}, {transform_indices = @transform_2, window_bounds = array<i64: 8, 256>}, {transform_indices = @transform_3, window_bounds = array<i64: 32, 256>}, {transform_indices = @transform_4, window_bounds = array<i64: 1, 1>}, {transform_indices = @transform_5, window_bounds = array<i64: 32, 256>}, {transform_indices = @transform_6, window_bounds = array<i64: 32, 256>}, {transform_indices = @transform_7, window_bounds = array<i64: 32, 256>}]} {
    %c0 = arith.constant 0 : index
    %c0_0 = arith.constant 0 : index
    %0 = vector.load %arg1[%c0, %c0_0] : memref<32x256xf32, #tpu.memory_space<vmem>>, vector<32x256xf32>
    %c0_1 = arith.constant 0 : index
    %c0_2 = arith.constant 0 : index
    %1 = vector.load %arg4[%c0_1, %c0_2] : memref<32x256xf32, #tpu.memory_space<vmem>>, vector<32x256xf32>
    %cst = arith.constant 1.000000e+00 : f32
    %2 = vector.broadcast %cst : f32 to vector<32x256xf32>
    %3 = arith.subf %2, %1 : vector<32x256xf32>
    %4 = tpu.iota {dimensions = array<i32: 0>} : vector<32x256xi32>
    %5 = tpu.iota {dimensions = array<i32: 1>} : vector<32x256xi32>
    %c0_i32 = arith.constant 0 : i32
    %6 = arith.cmpi sgt, %arg0, %c0_i32 : i32
    %c7_i32 = arith.constant 7 : i32
    %c0_i32_3 = arith.constant 0 : i32
    %7 = arith.select %6, %c7_i32, %c0_i32_3 : i32
    %c2_i32 = arith.constant 2 : i32
    %8 = arith.cmpi slt, %arg0, %c2_i32 : i32
    %c0_i32_4 = arith.constant 0 : i32
    %c7_i32_5 = arith.constant 7 : i32
    %9 = arith.select %8, %c0_i32_4, %c7_i32_5 : i32
    %10 = arith.index_cast %7 : i32 to index
    %c0_6 = arith.constant 0 : index
    %11 = vector.load %arg2[%10, %c0_6] : memref<8x256xf32, #tpu.memory_space<vmem>>, vector<1x256xf32>
    %12 = arith.index_cast %9 : i32 to index
    %c0_7 = arith.constant 0 : index
    %13 = vector.load %arg3[%12, %c0_7] : memref<8x256xf32, #tpu.memory_space<vmem>>, vector<1x256xf32>
    %cst_8 = arith.constant 1.000000e+00 : f32
    %14 = vector.broadcast %cst_8 : f32 to vector<32x256xf32>
    %15 = arith.subf %14, %0 : vector<32x256xf32>
    %16 = arith.mulf %15, %3 : vector<32x256xf32>
    %cst_9 = arith.constant 1.000000e+00 : f32
    %17 = vector.broadcast %cst_9 : f32 to vector<32x256xf32>
    %18 = arith.subf %17, %16 : vector<32x256xf32>
    %c0_i32_10 = arith.constant 0 : i32
    %19 = vector.broadcast %c0_i32_10 : i32 to vector<32x256xi32>
    %c255_i32 = arith.constant 255 : i32
    %20 = vector.broadcast %c255_i32 : i32 to vector<32x256xi32>
    %21 = arith.cmpi eq, %5, %20 : vector<32x256xi32>
    %c255_i32_11 = arith.constant 255 : i32
    %22 = tpu.dynamic_rotate %0 by %c255_i32_11 dim 1 : vector<32x256xf32>, i32 -> vector<32x256xf32>
    %23 = arith.select %21, %0, %22 : vector<32x256xi1>, vector<32x256xf32>
    %cst_12 = arith.constant 1.000000e+00 : f32
    %24 = vector.broadcast %cst_12 : f32 to vector<32x256xf32>
    %25 = arith.subf %24, %23 : vector<32x256xf32>
    %26 = arith.mulf %25, %3 : vector<32x256xf32>
    %cst_13 = arith.constant 1.000000e+00 : f32
    %27 = vector.broadcast %cst_13 : f32 to vector<32x256xf32>
    %28 = arith.subf %27, %26 : vector<32x256xf32>
    %29 = arith.cmpf olt, %28, %18 : vector<32x256xf32>
    %30 = arith.select %29, %28, %18 : vector<32x256xi1>, vector<32x256xf32>
    %c1_i32 = arith.constant 1 : i32
    %31 = vector.broadcast %c1_i32 : i32 to vector<32x256xi32>
    %32 = arith.select %29, %31, %19 : vector<32x256xi1>, vector<32x256xi32>
    %c0_i32_14 = arith.constant 0 : i32
    %33 = vector.broadcast %c0_i32_14 : i32 to vector<32x256xi32>
    %34 = arith.cmpi eq, %5, %33 : vector<32x256xi32>
    %c1_i32_15 = arith.constant 1 : i32
    %35 = tpu.dynamic_rotate %0 by %c1_i32_15 dim 1 : vector<32x256xf32>, i32 -> vector<32x256xf32>
    %36 = arith.select %34, %0, %35 : vector<32x256xi1>, vector<32x256xf32>
    %cst_16 = arith.constant 1.000000e+00 : f32
    %37 = vector.broadcast %cst_16 : f32 to vector<32x256xf32>
    %38 = arith.subf %37, %36 : vector<32x256xf32>
    %39 = arith.mulf %38, %3 : vector<32x256xf32>
    %cst_17 = arith.constant 1.000000e+00 : f32
    %40 = vector.broadcast %cst_17 : f32 to vector<32x256xf32>
    %41 = arith.subf %40, %39 : vector<32x256xf32>
    %42 = arith.cmpf olt, %41, %30 : vector<32x256xf32>
    %43 = arith.select %42, %41, %30 : vector<32x256xi1>, vector<32x256xf32>
    %c2_i32_18 = arith.constant 2 : i32
    %44 = vector.broadcast %c2_i32_18 : i32 to vector<32x256xi32>
    %45 = arith.select %42, %44, %32 : vector<32x256xi1>, vector<32x256xi32>
    %c31_i32 = arith.constant 31 : i32
    %46 = vector.broadcast %c31_i32 : i32 to vector<32x256xi32>
    %47 = arith.cmpi eq, %4, %46 : vector<32x256xi32>
    %c31_i32_19 = arith.constant 31 : i32
    %48 = tpu.dynamic_rotate %0 by %c31_i32_19 dim 0 : vector<32x256xf32>, i32 -> vector<32x256xf32>
    %49 = vector.shape_cast %13 : vector<1x256xf32> to vector<1x256xf32>
    %50 = vector.broadcast %49 : vector<1x256xf32> to vector<32x256xf32>
    %51 = arith.select %47, %50, %48 : vector<32x256xi1>, vector<32x256xf32>
    %cst_20 = arith.constant 1.000000e+00 : f32
    %52 = vector.broadcast %cst_20 : f32 to vector<32x256xf32>
    %53 = arith.subf %52, %51 : vector<32x256xf32>
    %54 = arith.mulf %53, %3 : vector<32x256xf32>
    %cst_21 = arith.constant 1.000000e+00 : f32
    %55 = vector.broadcast %cst_21 : f32 to vector<32x256xf32>
    %56 = arith.subf %55, %54 : vector<32x256xf32>
    %57 = arith.cmpf olt, %56, %43 : vector<32x256xf32>
    %58 = arith.select %57, %56, %43 : vector<32x256xi1>, vector<32x256xf32>
    %c3_i32 = arith.constant 3 : i32
    %59 = vector.broadcast %c3_i32 : i32 to vector<32x256xi32>
    %60 = arith.select %57, %59, %45 : vector<32x256xi1>, vector<32x256xi32>
    %c0_i32_22 = arith.constant 0 : i32
    %61 = vector.broadcast %c0_i32_22 : i32 to vector<32x256xi32>
    %62 = arith.cmpi eq, %4, %61 : vector<32x256xi32>
    %c1_i32_23 = arith.constant 1 : i32
    %63 = tpu.dynamic_rotate %0 by %c1_i32_23 dim 0 : vector<32x256xf32>, i32 -> vector<32x256xf32>
    %64 = vector.shape_cast %11 : vector<1x256xf32> to vector<1x256xf32>
    %65 = vector.broadcast %64 : vector<1x256xf32> to vector<32x256xf32>
    %66 = arith.select %62, %65, %63 : vector<32x256xi1>, vector<32x256xf32>
    %cst_24 = arith.constant 1.000000e+00 : f32
    %67 = vector.broadcast %cst_24 : f32 to vector<32x256xf32>
    %68 = arith.subf %67, %66 : vector<32x256xf32>
    %69 = arith.mulf %68, %3 : vector<32x256xf32>
    %cst_25 = arith.constant 1.000000e+00 : f32
    %70 = vector.broadcast %cst_25 : f32 to vector<32x256xf32>
    %71 = arith.subf %70, %69 : vector<32x256xf32>
    %72 = arith.cmpf olt, %71, %58 : vector<32x256xf32>
    %73 = arith.select %72, %71, %58 : vector<32x256xi1>, vector<32x256xf32>
    %c4_i32 = arith.constant 4 : i32
    %74 = vector.broadcast %c4_i32 : i32 to vector<32x256xi32>
    %75 = arith.select %72, %74, %60 : vector<32x256xi1>, vector<32x256xi32>
    %c0_26 = arith.constant 0 : index
    %c0_27 = arith.constant 0 : index
    %76 = memref.load %arg5[%c0_26, %c0_27] : memref<1x1xf32, #tpu.memory_space<smem>>
    %c0_28 = arith.constant 0 : index
    %c0_29 = arith.constant 0 : index
    %77 = vector.load %arg6[%c0_28, %c0_29] : memref<32x256xf32, #tpu.memory_space<vmem>>, vector<32x256xf32>
    tpu.vector_store %arg6[%c0_28, %c0_29], %73 {strides = array<i32>} : memref<32x256xf32, #tpu.memory_space<vmem>>, vector<32x256xf32>,
    %78 = arith.trunci %75 : vector<32x256xi32> to vector<32x256xi8>
    %c0_30 = arith.constant 0 : index
    %c0_31 = arith.constant 0 : index
    %79 = vector.load %arg7[%c0_30, %c0_31] : memref<32x256xi8, #tpu.memory_space<vmem>>, vector<32x256xi8>
    tpu.vector_store %arg7[%c0_30, %c0_31], %78 {strides = array<i32>} : memref<32x256xi8, #tpu.memory_space<vmem>>, vector<32x256xi8>,
    %cst_32 = arith.constant 2.000000e+00 : f32
    %80 = arith.mulf %cst_32, %76 : f32
    %cst_33 = arith.constant 1.000000e+00 : f32
    %81 = vector.broadcast %cst_33 : f32 to vector<32x256xf32>
    %82 = arith.subf %81, %73 : vector<32x256xf32>
    %83 = vector.broadcast %80 : f32 to vector<32x256xf32>
    %84 = arith.mulf %83, %82 : vector<32x256xf32>
    %cst_34 = arith.constant 1.440000e+03 : f32
    %85 = vector.broadcast %cst_34 : f32 to vector<32x256xf32>
    %86 = arith.mulf %85, %73 : vector<32x256xf32>
    %87 = arith.addf %84, %86 : vector<32x256xf32>
    %c0_35 = arith.constant 0 : index
    %c0_36 = arith.constant 0 : index
    %88 = vector.load %arg8[%c0_35, %c0_36] : memref<32x256xf32, #tpu.memory_space<vmem>>, vector<32x256xf32>
    tpu.vector_store %arg8[%c0_35, %c0_36], %87 {strides = array<i32>} : memref<32x256xf32, #tpu.memory_space<vmem>>, vector<32x256xf32>,
    return
  }
  func.func @transform_0(%arg0: i32) -> (i32, i32) {
    %c0_i32 = arith.constant 0 : i32
    %c0_i32_0 = arith.constant 0 : i32
    return %arg0, %c0_i32 : i32, i32
  }
  func.func @transform_1(%arg0: i32) -> (i32, i32) {
    %c4_i32 = arith.constant 4 : i32
    %0 = arith.muli %arg0, %c4_i32 : i32
    %c1_i32 = arith.constant 1 : i32
    %1 = arith.subi %0, %c1_i32 : i32
    %c0_i32 = arith.constant 0 : i32
    %2 = arith.maxsi %1, %c0_i32 : i32
    %c0_i32_0 = arith.constant 0 : i32
    %c0_i32_1 = arith.constant 0 : i32
    return %2, %c0_i32_0 : i32, i32
  }
  func.func @transform_2(%arg0: i32) -> (i32, i32) {
    %c1_i32 = arith.constant 1 : i32
    %0 = arith.addi %arg0, %c1_i32 : i32
    %c4_i32 = arith.constant 4 : i32
    %1 = arith.muli %0, %c4_i32 : i32
    %c11_i32 = arith.constant 11 : i32
    %2 = arith.minsi %1, %c11_i32 : i32
    %c0_i32 = arith.constant 0 : i32
    %c0_i32_0 = arith.constant 0 : i32
    return %2, %c0_i32 : i32, i32
  }
  func.func @transform_3(%arg0: i32) -> (i32, i32) {
    %c0_i32 = arith.constant 0 : i32
    %c0_i32_0 = arith.constant 0 : i32
    return %arg0, %c0_i32 : i32, i32
  }
  func.func @transform_4(%arg0: i32) -> (i32, i32) {
    %c0_i32 = arith.constant 0 : i32
    %c0_i32_0 = arith.constant 0 : i32
    %c0_i32_1 = arith.constant 0 : i32
    return %c0_i32, %c0_i32_0 : i32, i32
  }
  func.func @transform_5(%arg0: i32) -> (i32, i32) {
    %c0_i32 = arith.constant 0 : i32
    %c0_i32_0 = arith.constant 0 : i32
    return %arg0, %c0_i32 : i32, i32
  }
  func.func @transform_6(%arg0: i32) -> (i32, i32) {
    %c0_i32 = arith.constant 0 : i32
    %c0_i32_0 = arith.constant 0 : i32
    return %arg0, %c0_i32 : i32, i32
  }
  func.func @transform_7(%arg0: i32) -> (i32, i32) {
    %c0_i32 = arith.constant 0 : i32
    %c0_i32_0 = arith.constant 0 : i32
    return %arg0, %c0_i32 : i32, i32
  }
}

</mosaic_0001>

<bundles_post_ra>
// kernel: tpu_custom_call.1
= control target key start
LH: loop header
LB: loop body
LE: loop exit
PB: predicated region body
PF: predicated region fallthrough
CT: control target
= control target key end

     0   :  { %s3064_s0 = inlined_call_operand.hbm [shape: f32[96,256], index: 0, kind: input, shape index: {}]   ;;  %s3065_s1 = inlined_call_operand.hbm [shape: f32[96,256], index: 1, kind: input, shape index: {}]   ;;  %s3066_s2 = inlined_call_operand.hbm [shape: f32[96,256], index: 2, kind: input, shape index: {}]   ;;  %s3067_s3 = inlined_call_operand.hbm [shape: f32[96,256], index: 3, kind: input, shape index: {}]   ;;  %s3068_s4 = inlined_call_operand.<no memory space> [shape: f32[1,1], index: 4, kind: input, shape index: {}]   ;;  %s3069_s5 = inlined_call_operand.hbm [shape: f32[96,256], index: 5, kind: output, shape index: {0}]   ;;  %s3070_s6 = inlined_call_operand.hbm [shape: s8[96,256], index: 6, kind: output, shape index: {1}]   ;;  %s3071_s7 = inlined_call_operand.hbm [shape: f32[96,256], index: 7, kind: output, shape index: {2}]  }
   0x1   :  { %3104 = sst [smem:[#allocation31_spill]] %s3065_s1 }
   0x2   :  { %3105 = sst [smem:[#allocation32_spill]] %s3070_s6 }
   0x3   :  { %3106 = sst [smem:[#allocation33_spill]] %s3071_s7 }
   0x4   :  { %13 = sst [smem:[#allocation2]] %s3068_s4 }
   0x5   :  { %14 = vsyncpa [#allocation4], 0 }
   0x6   :  { %16 = vsyncpa [#allocation4 + $0x1], 0 }
   0x7   :  { %17 = vsyncpa [#allocation7], 0 }
   0x8   :  { %19 = vsyncpa [#allocation7 + $0x1], 0 }
   0x9   :  { %20 = vsyncpa [#allocation10], 0 }
   0xa   :  { %22 = vsyncpa [#allocation10 + $0x1], 0 }
   0xb   :  { %23 = vsyncpa [#allocation5], 0 }
   0xc   :  { %25 = vsyncpa [#allocation5 + $0x1], 0 }
   0xd   :  { %26 = vsyncpa [#allocation13], 0 }
   0xe   :  { %28 = vsyncpa [#allocation13 + $0x1], 0  ;;  %s1773_s26 = smov 0   ;;  %s1775_s27 = smov 0  }
   0xf   :  { %s1777_s28 = smov 0   ;;  %s1779_s29 = smov 0  }
  0x10   :  { %s1781_s30 = smov 0   ;;  %s1783_s4 = smov 0  }
  0x11   :  { %s1785_s8 = smov 0   ;;  %s1787_s9 = smov 0  }
  0x12   :  { %s1789_s10 = smov 0   ;;  %s1791_s11 = smov 0  }
  0x13 LB: > { %3107 = sst [smem:[#allocation21_spill]] %s1698_s4  ;;  %s1822_s12 = sadd.s32 4294967295, %s1714_s11   ;;  %s1714_s11 = sphi %s1791_s11, %s3256_s11   ;;  %s1710_s10 = sphi %s1789_s10, %s3260_s10   ;;  %s1706_s9 = sphi %s1787_s9, %s3268_s9   ;;  %s1702_s8 = sphi %s1785_s8, %s3267_s8   ;;  %s1698_s4 = sphi %s1783_s4, %s3266_s4   ;;  %s1694_s30 = sphi %s1781_s30, %s3265_s30   ;;  %s1690_s29 = sphi %s1779_s29, %s3264_s29   ;;  %s1686_s28 = sphi %s1777_s28, %s3263_s28   ;;  %s1682_s27 = sphi %s1775_s27, %s3262_s27   ;;  %s1678_s26 = sphi %s1773_s26, %s3261_s26  }
  0x14   : > { %3108 = sst [smem:[#allocation22_spill]] %s1702_s8  ;;  %p3077_p0 = scmp.eq.s32.totalorder %s1714_s11, 0 }
  0x15   : > { %3109 = sst [smem:[#allocation23_spill]] %s1710_s10  ;;  %p3076_p1 = scmp.eq.s32.totalorder %s1822_s12, 0 }
  0x16   : > { %s1209_s13 = sshll.u32 %s1714_s11, 2  ;;  %s75_s17 = sadd.s32 1, %s1698_s4 }
  0x17   : > { %s1210_s14 = sadd.s32 4294967295, %s1209_s13  ;;  %s1827_s15 = sadd.s32 4, %s1209_s13 }
  0x18   : > { %p66_p2 = scmp.gt.s32.totalorder %s1210_s14, 0  ;;  %s1212_s16 = sadd.s32 4294967295, %s1827_s15 }
  0x19   : > { %p70_p3 = scmp.gt.s32.totalorder %s1212_s16, 0  ;;  %p82_p4 = scmp.ne.s32.totalorder %s1698_s4, %s1694_s30 }
  0x1a   : > { %s3270_s14 = smov (!%p66_p2, %s1210_s14), 0  ;;  %p88_p5 = scmp.ne.s32.totalorder %s1694_s30, %s1690_s29 }
  0x1b   : > { %s3272_s16 = smov (!%p70_p3, %s1212_s16), 0  ;;  %s3073_s19 = sadd.s32 4, %s1827_s15 }
  0x1c   : > { %s72_s18 = ssub.s32 %s3270_s14, %s3272_s16  ;;  %p1837_p7 = por %p82_p4, %p3077_p0 }
  0x1d   : > { %p73_p6 = scmp.eq.s32.totalorder %s72_s18, 0  ;;  %p1843_p8 = por %p88_p5, %p3076_p1 }
  0x1e   : > { %p1849_p9 = scmp.lt.s32.totalorder %s3073_s19, 11  ;;  %p3075_p11 = scmp.lt.s32.totalorder %s1714_s11, 3 }
  0x1f   : > { %s3111_s21 = scalar_select %p1843_p8, 1, 0 }
  0x20   : > { %s1854_s23 = scalar_select %p73_p6, %s1698_s4, %s75_s17  }
  0x21   : > { %s296_s24 = sand.u32 1, %s1714_s11   ;;  %s298_s25 = sand.u32 1, %s1698_s4  }
  0x22   : > { %3113 = sst [smem:[#allocation24_spill]] %s1854_s23  ;;  %s1221_s29 = sshll.u32 %s298_s25, 4 }
  0x23   : > { %s1267_s13 = sshll.u32 %s3270_s14, 8  ;;  %s3114_s1 = sld [smem:[#allocation31_spill]] }
  0x24   : > { %s300_s19 = scalar_lea.vmem [#allocation6], %s1221_s29  ;;  %p1869_p12 = pnand %p3075_p11, %p1837_p7 }
  0x25   : > { %s312_s6 = sshll.u32 %s300_s19, 4  ;;  %s1877_s14 = scalar_lea.sflag [#allocation7], %s296_s24  ;;  %s1873_s6 = int_to_ptr.vmem [resolvable:$true] %s312_s6 }
  0x26   : > { %p1410_p4 = pneg %p1869_p12 }
  0x29   : > { %s1863_s7 = scalar_lea.hbm %s3114_s1, %s1267_s13  ;;  %s1413_s29 = scalar_lea.hbm %s3114_s1, 3072 }
  0x2a   : > { %s1408_s25 = scalar_lea.hbm %s1863_s7, 256  ;;  %p1414_p7 = scmp.lt.u32.totalorder %s1863_s7, %s3114_s1 }
  0x2b   : > { %p1409_p3 = scmp.ne.s32.totalorder %s1863_s7, %s1408_s25  ;;  %p1415_p11 = scmp.lt.u32.totalorder %s1413_s29, %s1408_s25 }
  0x2c   : > { %p1417_p10 = scmp.lt.u32.totalorder %s1408_s25, %s1863_s7 }
  0x2d   : > { %p1411_p5 = pnand %p1410_p4, %p1409_p3  ;;  %p1416_p1 = por %p1415_p11, %p1414_p7 }
  0x2f   : > { %p1412_p6 = pneg %p1411_p5  ;;  %p1418_p0 = por %p1417_p10, %p1416_p1 }
  0x31   : > { %p1419_p13 = pnand %p1418_p0, %p1412_p6 }
  0x33   : > { %1422 = shalt.err (!%p1419_p13)
}
  0x34   : > { %s1423_s24 = scalar_lea.vmem %s1873_s6, 256  ;;  %s1716_s18 = smov [#allocation6]  }
  0x35   : > { %p1424_p3 = scmp.ne.s32.totalorder %s1873_s6, %s1423_s24  ;;  %s1428_s19 = sshll.u32 %s1716_s18, 4  ;;  %s1429_s19 = int_to_ptr.vmem [resolvable:$false] %s1428_s19 }
  0x36   : > { %s1430_s20 = scalar_lea.vmem %s1429_s19, 512  ;;  %p1431_p8 = scmp.lt.s32.totalorder %s1873_s6, %s1429_s19 }
  0x37   : > { %p1426_p5 = pnand %p1424_p3, %p1410_p4  ;;  %p1432_p11 = scmp.lt.s32.totalorder %s1430_s20, %s1423_s24 }
  0x39   : > { %p1427_p2 = pneg %p1426_p5  ;;  %p1433_p7 = por %p1432_p11, %p1431_p8 }
  0x3b   : > { %p1434_p1 = pnand %p1433_p7, %p1427_p2 }
  0x3d   : > { %1437 = shalt.err (!%p1434_p1)
}
  0x3e   : > { %1302 = dma.hbm_to_vmem [thread:$0]  (!%p1869_p12), %s1863_s7, 256, %s1873_s6, %s1877_s14  }
  0x3f   : > { %p3116_p0 = scmp.lt.s32.totalorder %s1714_s11, 4  ;;  %p3117_p8 = scmp.ge.s32.totalorder %s1714_s11, 1 }
  0x40   : > { %s3079_s25 = sadd.s32 4294967294, %s1714_s11   ;;  %s1915_s29 = sadd.s32 1, %s1714_s11  }
  0x41   : > { %p1909_p10 = pnand %p3117_p8, %p3116_p0  ;;  %3119 = sst [smem:[#allocation25_spill]] %s1915_s29 }
  0x42   : > { %s41_s13 = sadd.s32 1, %s1710_s10  ;;  %s38_s16 = ssub.s32 %s1714_s11, %s1915_s29 }
  0x43   : > { %s3118_s17 = scalar_select %p1909_p10, 1, 0 }
  0x44   : > { %p48_p13 = scmp.ne.s32.totalorder %s1710_s10, %s1706_s9  ;;  %p39_p2 = scmp.eq.s32.totalorder %s38_s16, 0 }
  0x45   : > { %p54_p4 = scmp.ne.s32.totalorder %s1706_s9, %s1702_s8  ;;  %p3120_p6 = scmp.eq.s32.totalorder %s1714_s11, 0 }
  0x46   : > { %p3121_p12 = scmp.eq.s32.totalorder %s1822_s12, 2  ;;  %p3124_p11 = scmp.eq.s32.totalorder %s1822_s12, 0 }
  0x47   : > { %p50_p3 = por %p3120_p6, %p48_p13  ;;  %p199_p1 = scmp.eq.s32.totalorder %s3079_s25, 2 }
  0x48   : > { %p1928_p5 = por %p3121_p12, %p48_p13  ;;  %p1937_p7 = por %p3124_p11, %p54_p4 }
  0x49   : > { %s1933_s7 = scalar_select %p39_p2, %s1710_s10, %s41_s13  }
  0x4a   : > { %s3122_s6 = scalar_select %p1928_p5, 1, 0 }
  0x4b   : > { %3123 = sst [smem:[#allocation26_spill]] %s1933_s7  ;;  %s1944_s18 = sand.u32 1, %s1710_s10  }
  0x4c   : > { %s3125_s24 = scalar_select %p1937_p7, 1, 0 }
  0x4d   : > { %s3082_s19 = sshll.u32 %s1714_s11, 10  ;;  %p1947_p0 = por %p199_p1, %p54_p4 }
  0x4e   : > { %s1217_s16 = sshll.u32 %s1944_s18, 6  ;;  %s1957_s7 = scalar_lea.hbm %s3064_s0, %s3082_s19 }
  0x4f   : > { %s3126_s20 = scalar_select %p1947_p0, 1, 0 }
  0x50   : > { %p3128_p8 = scmp.lt.s32.totalorder %s1714_s11, 3  ;;  %s278_s10 = scalar_lea.vmem [#allocation3], %s1217_s16 }
  0x51   : > { %3127 = sst [smem:[#allocation27_spill]] %s3126_s20  ;;  %s286_s23 = sshll.u32 %s278_s10, 4  ;;  %s1967_s23 = int_to_ptr.vmem [resolvable:$true] %s286_s23 }
  0x52   : > { %p1961_p13 = pnand %p3128_p8, %p50_p3  ;;  %s275_s4 = scalar_lea.sflag [#allocation4], %s1944_s18 }
  0x53   : > { %s1438_s1 = scalar_lea.hbm %s1957_s7, 1024  ;;  %s1443_s29 = scalar_lea.hbm %s3064_s0, 3072 }
  0x54   : > { %s3129_s25 = scalar_select %p1961_p13, 1, 0 }
  0x55   : > { %p1439_p2 = scmp.ne.s32.totalorder %s1957_s7, %s1438_s1  ;;  %p3091_p4 = pneg %p1961_p13 }
  0x56   : > { %p1444_p3 = scmp.lt.u32.totalorder %s1957_s7, %s3064_s0  ;;  %p1445_p11 = scmp.lt.u32.totalorder %s1443_s29, %s1438_s1 }
  0x57   : > { %p1441_p6 = pnand %p3091_p4, %p1439_p2  ;;  %p1447_p8 = scmp.lt.u32.totalorder %s1438_s1, %s1957_s7 }
  0x58   : > { %p1446_p1 = por %p1445_p11, %p1444_p3 }
  0x59   : > { %p1442_p12 = pneg %p1441_p6 }
  0x5a   : > { %p1448_p0 = por %p1447_p8, %p1446_p1 }
  0x5c   : > { %p1449_p5 = pnand %p1448_p0, %p1442_p12 }
  0x5e   : > { %1452 = shalt.err (!%p1449_p5)
}
  0x5f   : > { %s1453_s10 = scalar_lea.vmem %s1967_s23, 1024  ;;  %s1717_s19 = smov [#allocation3]  }
  0x60   : > { %p1454_p2 = scmp.ne.s32.totalorder %s1967_s23, %s1453_s10  ;;  %s1458_s13 = sshll.u32 %s1717_s19, 4  ;;  %s1459_s13 = int_to_ptr.vmem [resolvable:$false] %s1458_s13 }
  0x61   : > { %s1460_s8 = scalar_lea.vmem %s1459_s13, 2048  ;;  %p1461_p10 = scmp.lt.s32.totalorder %s1967_s23, %s1459_s13 }
  0x62   : > { %p1456_p6 = pnand %p1454_p2, %p3091_p4  ;;  %p1462_p3 = scmp.lt.s32.totalorder %s1460_s8, %s1453_s10 }
  0x64   : > { %p1457_p7 = pneg %p1456_p6  ;;  %p1463_p11 = por %p1462_p3, %p1461_p10 }
  0x66   : > { %p1464_p1 = pnand %p1463_p11, %p1457_p7 }
  0x68   : > { %1467 = shalt.err (!%p1464_p1)
}
  0x69   : > { %s3089_s29 = smov 256   ;;  %s3090_s20 = smov 16  }
  0x6a   : > { %1299 = dma.hbm_to_vmem [thread:$0]  (!%p1961_p13), %s1957_s7, 1024, %s1967_s23, %s275_s4, %s3089_s29, %s3089_s29, %s3090_s20  }
  0x6b   : > { %p100_p10 = scmp.lt.s32.totalorder %s1827_s15, 11  ;;  %s3130_s1 = sadd.s32 4, %s1827_s15 }
  0x6c   : > { %s3274_s1 = smov (!%p1849_p9, %s3130_s1), 11  ;;  %s109_s10 = sadd.s32 1, %s1686_s28 }
  0x6d   : > { %s3276_s15 = smov (!%p100_p10, %s1827_s15), 11  ;;  %p116_p5 = scmp.ne.s32.totalorder %s1686_s28, %s1682_s27 }
  0x6e   : > { %s106_s19 = ssub.s32 %s3276_s15, %s3274_s1  ;;  %p122_p7 = scmp.ne.s32.totalorder %s1682_s27, %s1678_s26 }
  0x6f   : > { %p107_p0 = scmp.eq.s32.totalorder %s106_s19, 0  ;;  %p3131_p12 = scmp.eq.s32.totalorder %s1714_s11, 0 }
  0x70   : > { %p3132_p2 = scmp.eq.s32.totalorder %s1822_s12, 0  ;;  %s321_s8 = sand.u32 1, %s1686_s28  }
  0x71   : > { %p118_p8 = por %p116_p5, %p3131_p12  ;;  %s1226_s23 = sshll.u32 %s321_s8, 4 }
  0x72   : > { %p2015_p6 = por %p122_p7, %p3132_p2  ;;  %s1270_s22 = sshll.u32 %s3276_s15, 8 }
  0x73   : > { %s2021_s4 = scalar_select %p107_p0, %s1686_s28, %s109_s10  }
  0x74   : > { %s3133_s13 = scalar_select %p2015_p6, 1, 0 }
  0x75   : > { %s2026_s20 = scalar_lea.hbm %s3066_s2, %s1270_s22  ;;  %s323_s26 = scalar_lea.vmem [#allocation8], %s1226_s23 }
  0x76   : > { %s335_s1 = sshll.u32 %s323_s26, 4  ;;  %p3134_p9 = scmp.lt.s32.totalorder %s1714_s11, 3  ;;  %s336_s1 = int_to_ptr.vmem [resolvable:$true] %s335_s1 }
  0x77   : > { %s1468_s15 = scalar_lea.hbm %s2026_s20, 256  ;;  %s1473_s8 = scalar_lea.hbm %s3066_s2, 3072 }
  0x78   : > { %p2030_p3 = pnand %p3134_p9, %p118_p8  ;;  %p1469_p11 = scmp.ne.s32.totalorder %s2026_s20, %s1468_s15 }
  0x79   : > { %p1474_p7 = scmp.lt.u32.totalorder %s2026_s20, %s3066_s2  ;;  %p1475_p0 = scmp.lt.u32.totalorder %s1473_s8, %s1468_s15 }
  0x7a   : > { %p1470_p1 = pneg %p2030_p3  ;;  %p1477_p8 = scmp.lt.u32.totalorder %s1468_s15, %s2026_s20 }
  0x7b   : > { %p1476_p12 = por %p1475_p0, %p1474_p7 }
  0x7c   : > { %p1471_p10 = pnand %p1470_p1, %p1469_p11 }
  0x7d   : > { %p1478_p2 = por %p1477_p8, %p1476_p12 }
  0x7e   : > { %p1472_p5 = pneg %p1471_p10 }
  0x80   : > { %p1479_p9 = pnand %p1478_p2, %p1472_p5 }
  0x82   : > { %1482 = shalt.err (!%p1479_p9)
}
  0x83   : > { %s1483_s7 = scalar_lea.vmem %s336_s1, 256  ;;  %s1720_s26 = smov [#allocation8]  }
  0x84   : > { %p1484_p4 = scmp.ne.s32.totalorder %s336_s1, %s1483_s7  ;;  %s1488_s29 = sshll.u32 %s1720_s26, 4  ;;  %s1489_s29 = int_to_ptr.vmem [resolvable:$false] %s1488_s29 }
  0x85   : > { %s1490_s10 = scalar_lea.vmem %s1489_s29, 512  ;;  %p1491_p6 = scmp.lt.s32.totalorder %s336_s1, %s1489_s29 }
  0x86   : > { %p1486_p11 = pnand %p1484_p4, %p1470_p1  ;;  %p1492_p13 = scmp.lt.s32.totalorder %s1490_s10, %s1483_s7 }
  0x88   : > { %p1487_p10 = pneg %p1486_p11  ;;  %p1493_p0 = por %p1492_p13, %p1491_p6 }
  0x8a   : > { %p1494_p7 = pnand %p1493_p0, %p1487_p10 }
  0x8c   : > { %1497 = shalt.err (!%p1494_p7)
}
  0x8d   : > { %1305 = dma.hbm_to_vmem [thread:$0]  (!%p2030_p3), %s2026_s20, 256, %s336_s1, %s1877_s14  }
  0x8e   : > { %s3136_s15 = sshll.u32 %s1714_s11, 10  ;;  %s346_s7 = scalar_lea.vmem [#allocation9], %s1217_s16 }
  0x8f   : > { %s2061_s22 = scalar_lea.hbm %s3067_s3, %s3136_s15  ;;  %s354_s19 = sshll.u32 %s346_s7, 4  ;;  %s2065_s19 = int_to_ptr.vmem [resolvable:$true] %s354_s19 }
  0x90   : > { %s343_s26 = scalar_lea.sflag [#allocation10], %s1944_s18  ;;  %s1498_s29 = scalar_lea.hbm %s2061_s22, 1024 }
  0x91   : > { %p1499_p13 = scmp.ne.s32.totalorder %s2061_s22, %s1498_s29  ;;  %p3137_p4 = scmp.ne.s32.totalorder %s3129_s25, 0 }
  0x92   : > { %s1503_s1 = scalar_lea.hbm %s3067_s3, 3072  ;;  %p1504_p5 = scmp.lt.u32.totalorder %s2061_s22, %s3067_s3 }
  0x93   : > { %p3138_p6 = pneg %p3137_p4  ;;  %p1505_p12 = scmp.lt.u32.totalorder %s1503_s1, %s1498_s29 }
  0x94   : > { %p1507_p2 = scmp.lt.u32.totalorder %s1498_s29, %s2061_s22 }
  0x95   : > { %p1501_p3 = pnand %p1499_p13, %p3138_p6  ;;  %p1506_p8 = por %p1505_p12, %p1504_p5 }
  0x97   : > { %p1502_p1 = pneg %p1501_p3  ;;  %p1508_p9 = por %p1507_p2, %p1506_p8 }
  0x99   : > { %p1509_p11 = pnand %p1508_p9, %p1502_p1 }
  0x9b   : > { %1512 = shalt.err (!%p1509_p11)
}
  0x9c   : > { %s1513_s16 = scalar_lea.vmem %s2065_s19, 1024  ;;  %p3139_p0 = pmov %p3138_p6 }
  0x9d   : > { %p1514_p10 = scmp.ne.s32.totalorder %s2065_s19, %s1513_s16  ;;  %s1721_s8 = smov [#allocation9]  }
  0x9e   : > { %s1518_s23 = sshll.u32 %s1721_s8, 4  ;;  %s1519_s23 = int_to_ptr.vmem [resolvable:$false] %s1518_s23 }
  0x9f   : > { %p1516_p7 = pnand %p1514_p10, %p3139_p0  ;;  %s1520_s7 = scalar_lea.vmem %s1519_s23, 2048 }
  0xa0   : > { %p1521_p6 = scmp.lt.s32.totalorder %s2065_s19, %s1519_s23  ;;  %p1522_p3 = scmp.lt.s32.totalorder %s1520_s7, %s1513_s16 }
  0xa1   : > { %p1517_p13 = pneg %p1516_p7 }
  0xa2   : > { %p1523_p5 = por %p1522_p3, %p1521_p6 }
  0xa4   : > { %p1524_p12 = pnand %p1523_p5, %p1517_p13 }
  0xa6   : > { %1527 = shalt.err (!%p1524_p12)
}
  0xa7   : > { %s3140_s29 = smov 16   ;;  %s3141_s14 = smov 256  }
  0xa8   : > { %1308 = dma.hbm_to_vmem [thread:$0]  (!%p3137_p4), %s2061_s22, 1024, %s2065_s19, %s343_s26, %s3141_s14, %s3141_s14, %s3140_s29  }
  0xa9   : > { %p3142_p1 = scmp.ne.s32.totalorder %s3118_s17, 0 }
  0xab   : > { %366 = sbr.rel (%p3142_p1) target bundleno = 444 (0x1bc), region = 40 }
  0xb2   : > { %s2099_s20 = sand.u32 1, %s1706_s9   ;;  %p3143_p8 = scmp.ne.s32.totalorder %s3125_s24, 0 }
  0xb3   : > { %s2102_s1 = sshll.u32 %s2099_s20, 6  ;;  %s369_s25 = scalar_lea.sflag [#allocation4], %s2099_s20 }
  0xb4   : > { %s2106_s10 = scalar_lea.vmem [#allocation3], %s2102_s1 }
  0xb5   : > { %1653 = dma.done.wait (%p3143_p8), %s369_s25, 1024  }
  0xb6   : > { %1655 = vsyncadd (%p3143_p8), %s369_s25, 4294966272  ;;  %s377_s17 = sand.u32 1, %s1822_s12   ;;  %s379_s18 = sand.u32 1, %s1694_s30  }
  0xb7   : > { %s2114_s22 = sshll.u32 %s379_s18, 4  ;;  %s378_s19 = scalar_lea.sflag [#allocation7], %s377_s17 }
  0xb8   : > { %s381_s26 = scalar_lea.vmem [#allocation6], %s2114_s22  ;;  %p3144_p4 = scmp.ne.s32.totalorder %s3111_s21, 0 }
  0xba   : > { %1657 = dma.done.wait (%p3144_p4), %s378_s19, 256  }
  0xbb   : > { %1659 = vsyncadd (%p3144_p4), %s378_s19, 4294967040  ;;  %s388_s15 = sand.u32 1, %s1682_s27   ;;  %p3145_p2 = scmp.ne.s32.totalorder %s3133_s13, 0 }
  0xbc   : > { %s2124_s16 = sshll.u32 %s388_s15, 4 }
  0xbd   : > { %s390_s8 = scalar_lea.vmem [#allocation8], %s2124_s16 }
  0xbe   : > { %1661 = dma.done.wait (%p3145_p2), %s378_s19, 256  }
  0xbf   : > { %1663 = vsyncadd (%p3145_p2), %s378_s19, 4294967040  ;;  %s396_s23 = scalar_lea.sflag [#allocation10], %s2099_s20  ;;  %s2133_s7 = scalar_lea.vmem [#allocation9], %s2102_s1 }
  0xc0   : > { %1665 = dma.done.wait (%p3143_p8), %s396_s23, 1024  }
  0xc1   : > { %1667 = vsyncadd (%p3143_p8), %s396_s23, 4294966272  ;;  %v2140_v0 = vld [vmem:[%s2106_s10 + $0x20] sm:$0xff]  ;;  %s1722_s21 = smov 127   ;;  %v2148_v2 = vld [vmem:[%s2106_s10 + $0x30] sm:$0xff]  ;;  %s1723_s24 = smov 1   ;;  %v491_v8 = vlaneseq  ;;  %v3096_v53 = vmov 0  }
  0xc2   : > { %v2143_v1 = vld [vmem:[%s2106_s10] sm:$0xff]  ;;  %551 = vrot.lane.b32.xlu1 %v2140_v0, %s1722_s21  ;;  %v2151_v3 = vld [vmem:[%s2106_s10 + $0x10] sm:$0xff]  ;;  %v2156_v4 = vld [vmem:[%s2106_s10 + $0x18] sm:$0xff]  ;;  %p499_p9 = scmp.gt.s32.totalorder %s1822_s12, 0  ;;  %p501_p11 = scmp.lt.s32.totalorder %s1822_s12, 2  ;;  %v719_v14 = vrot.slane %v2140_v0, 1 }
  0xc3   : > { %547 = vrot.lane.b32.xlu0 %v2143_v1, %s1722_s21  ;;  %v2159_v5 = vld [vmem:[%s2106_s10 + $0x8] sm:$0xff]  ;;  %v2164_v6 = vld [vmem:[%s2106_s10 + $0x38] sm:$0xff]  ;;  %v2180_v9 = vand.u32 127, %v491_v8  ;;  %v477_v10 = vld [vmem:[%s2133_s7 + $0x10] sm:$0xff]  ;;  %v2185_v12 = vshrl.u32 %v491_v8, 7  ;;  %v807_v15 = vrot.slane %v2140_v0, 7 }
  0xc4   : > { %v2167_v7 = vld [vmem:[%s2106_s10 + $0x28] sm:$0xff]  ;;  %s500_s13 = scalar_select %p499_p9, 7, 0  ;;  %v478_v11 = vld [vmem:[%s2133_s7 + $0x18] sm:$0xff]  ;;  %v715_v16 = vrot.slane %v2143_v1, 1  ;;  %v803_v17 = vrot.slane %v2143_v1, 7 }
  0xc5   : > { %v2188_v13 = vadd.s32 128, %v2180_v9  ;;  %v2194_v18 = vsub.f32 1.0, %v477_v10  ;;  %v523_v19 = vsub.f32 1.0, %v2151_v3  ;;  %v475_v20 = vld [vmem:[%s2133_s7] sm:$0xff]  ;;  %v476_v21 = vld [vmem:[%s2133_s7 + $0x8] sm:$0xff]  ;;  %v721_v22 = vrot.slane %v2148_v2, 1 }
  0xc6   : > { %553 = vrot.lane.b32.xlu1 %v2148_v2, %s1722_s21  ;;  %s503_s29 = sshra.s32 %s500_s13, 3  ;;  %s506_s14 = sand.u32 7, %s500_s13  ;;  %v809_v23 = vrot.slane %v2148_v2, 7  ;;  %v2205_v24 = vsub.f32 1.0, %v478_v11  ;;  %v524_v25 = vsub.f32 1.0, %v2156_v4  ;;  %v717_v26 = vrot.slane %v2151_v3, 1 }
  0xc7   : > { %549 = vrot.lane.b32.xlu0 %v2151_v3, %s1722_s21  ;;  %s1273_s25 = sshll.u32 %s503_s29, 4  ;;  %v805_v27 = vrot.slane %v2151_v3, 7  ;;  %v718_v28 = vrot.slane %v2156_v4, 1  ;;  %v3095_v29 = vrot.slane %v2156_v4, 7  ;;  %v2214_v30 = vsub.f32 1.0, %v475_v20  ;;  %v481_v34 = vld [vmem:[%s2133_s7 + $0x30] sm:$0xff] }
  0xc8   : > { %s509_s10 = sadd.s32 %s1273_s25, %s506_s14  ;;  %v2216_v31 = vsub.f32 1.0, %v476_v21  ;;  %v522_v32 = vsub.f32 1.0, %v2159_v5  ;;  %v521_v33 = vsub.f32 1.0, %v2143_v1  ;;  %v716_v35 = vrot.slane %v2159_v5, 1  ;;  %v482_v38 = vld [vmem:[%s2133_s7 + $0x38] sm:$0xff]  ;;  %v479_v47 = vld [vmem:[%s2133_s7 + $0x20] sm:$0xff] }
  0xc9   : > { %s2201_s18 = scalar_select %p501_p11, 0, 7  ;;  %v804_v36 = vrot.slane %v2159_v5, 7  ;;  %v2224_v37 = vmul.f32 %v523_v19, %v2194_v18  ;;  %v739_v39 = vsub.s32 1, %v2185_v12  ;;  %v722_v40 = vrot.slane %v2164_v6, 1  ;;  %v480_v52 = vld [vmem:[%s2133_s7 + $0x28] sm:$0xff] }
  0xca   : > { %557 = vrot.lane.b32.xlu1 %v2156_v4, %s1722_s21  ;;  %s510_s19 = scalar_lea.vmem %s381_s26, %s509_s10 [#allocation6]  ;;  %v810_v41 = vrot.slane %v2164_v6, 7  ;;  %v720_v42 = vrot.slane %v2167_v7, 1  ;;  %v2233_v43 = vmul.f32 %v524_v25, %v2205_v24  ;;  %v808_v45 = vrot.slane %v2167_v7, 7  ;;  %s2271_s23 = sld [smem:[#allocation2]] }
  0xcb   : > { %555 = vrot.lane.b32.xlu0 %v2159_v5, %s1722_s21  ;;  %s512_s22 = sshra.s32 %s2201_s18, 3  ;;  %v511_v44 = vld [vmem:[%s510_s19] ss:$8 sm:$0x3]  ;;  %v2236_v46 = vsub.f32 1.0, %v481_v34  ;;  %vm811_vm0 = vcmp.lt.s32.totalorder %v2185_v12, 1  ;;  %v2242_v49 = vmul.f32 %v522_v32, %v2216_v31  ;;  %v2245_v50 = vmul.f32 %v521_v33, %v2214_v30 }
  0xcc   : > { %v735_v48 = vsub.s32 0, %v2185_v12  ;;  %v2247_v51 = vsub.f32 1.0, %v482_v38  ;;  %vm723_vm1 = vcmp.lt.s32.totalorder %v2185_v12, 7  ;;  %s515_s26 = sand.u32 7, %s2201_s18  ;;  %s1274_s15 = sshll.u32 %s512_s22, 4  ;;  %v527_v54 = vsub.f32 1.0, %v2148_v2 }
  0xcd   : > { %v528_v55 = vsub.f32 1.0, %v2164_v6  ;;  %v828_v56 = vrot.slane %v511_v44, %v739_v39  ;;  %v2258_v58 = vsub.f32 1.0, %v479_v47  ;;  %vm799_vm2 = vcmp.eq.s32.totalorder %v2185_v12, 0  ;;  %s518_s7 = sadd.s32 %s1274_s15, %s515_s26  ;;  %s1276_s13 = sshll.u32 %s1822_s12, 10 }
  0xce   : > { %561 = vrot.lane.b32.xlu1 %v2164_v6, %s1722_s21  ;;  %v819_v59 = vsel %vm811_vm0, %v810_v41, %v804_v36  ;;  %v2265_v60 = vsub.f32 1.0, %v480_v52  ;;  %v727_v61 = vsel %vm723_vm1, %v718_v28, %v720_v42  ;;  %v729_v62 = vsel %vm723_vm1, %v716_v35, %v718_v28  ;;  %s2891_s10 = scalar_lea.hbm %s3069_s5, %s1276_s13  ;;  %s1277_s18 = sshll.u32 %s1822_s12, 8 }
  0xcf   : > { %559 = vrot.lane.b32.xlu0 %v2167_v7, %s1722_s21  ;;  %v824_v63 = vrot.slane %v511_v44, %v735_v48  ;;  %v726_v10 = vsel %vm723_vm1, %v717_v26, %v719_v14  ;;  %v817_v11 = vsel %vm811_vm0, %v804_v36, %v3095_v29  ;;  %v818_v19 = vsel %vm811_vm0, %v809_v23, %v803_v17  ;;  %s519_s21 = scalar_lea.vmem %s390_s8, %s518_s7 [#allocation8]  ;;  %s2720_s8 = scalar_lea.vmem [#allocation11], %s2102_s1 }
  0xd0   : > { %v2295_v20 = vmul.f32 %v527_v54, %v2236_v46  ;;  %v525_v21 = vsub.f32 1.0, %v2140_v0  ;;  %v816_v25 = vsel %vm811_vm0, %v803_v17, %v805_v27  ;;  %v832_v28 = vsel %vm799_vm2, %v828_v56, %v819_v59  ;;  %s904_s16 = smul.f32 2.0, %s2271_s23  ;;  %s971_s29 = sshll.u32 %s2720_s8, 4  ;;  %s2893_s29 = int_to_ptr.vmem [resolvable:$true] %s971_s29 }
  0xd1   : > { %v526_v32 = vsub.f32 1.0, %v2167_v7  ;;  %v754_v33 = vsub.f32 1.0, %v727_v61  ;;  %v752_v34 = vsub.f32 1.0, %v729_v62  ;;  %v728_v36 = vsel %vm723_vm1, %v715_v16, %v717_v26  ;;  %s947_s15 = scalar_lea.sflag [#allocation5], %s2099_s20  ;;  %s1528_s23 = scalar_lea.vmem %s2893_s29, 1024 }
  0xd2   : > { %632 = vrot.lane.b32.xlu1 %v2151_v3, %s1723_s24  ;;  %v753_v38 = vsub.f32 1.0, %v726_v10  ;;  %v842_v44 = vsub.f32 1.0, %v817_v11  ;;  %v831_v47 = vsel %vm799_vm2, %v824_v63, %v818_v19  ;;  %v812_v17 = vsel %vm811_vm0, %v807_v15, %v809_v23  ;;  %v520_v10 = vld [vmem:[%s519_s21] ss:$8 sm:$0x3]  ;;  %p1529_p10 = scmp.ne.s32.totalorder %s2893_s29, %s1528_s23  ;;  %p3248_p0 = scmp.ne.s32.totalorder %s3122_s6, 0 }
  0xd3   : > { %630 = vrot.lane.b32.xlu0 %v2143_v1, %s1723_s24  ;;  %v2323_v54 = vmul.f32 %v528_v55, %v2247_v51  ;;  %v841_v26 = vsub.f32 1.0, %v816_v25  ;;  %v840_v56 = vsub.f32 1.0, %v832_v28  ;;  %vm563_vm3 = vcmp.lt.s32.totalorder %v2180_v9, 127  ;;  %s1725_s7 = smov [#allocation11]  }
  0xd4   : > { %v2328_v61 = vmul.f32 %v525_v21, %v2258_v58  ;;  %v751_v62 = vsub.f32 1.0, %v728_v36  ;;  %v495_v63 = vadd.s32 24, %v2185_v12  ;;  %vm546_vm4 = vcmp.eq.s32.totalorder %v2188_v13, 255  ;;  %p1530_p7 = pnand %p1529_p10, %p3248_p0  ;;  %s1532_s21 = sshll.u32 %s1725_s7, 4  ;;  %s1533_s21 = int_to_ptr.vmem [resolvable:$false] %s1532_s21 }
  0xd5   : > { %v2333_v23 = vmul.f32 %v526_v32, %v2265_v60  ;;  %v2336_v55 = vmul.f32 %v754_v33, %v2205_v24  ;;  %v839_v11 = vsub.f32 1.0, %v831_v47  ;;  %v845_v19 = vsub.f32 1.0, %v812_v17  ;;  %p1535_p6 = scmp.lt.s32.totalorder %s2893_s29, %s1533_s21 }
  0xd6   : > { %636 = vrot.lane.b32.xlu1 %v2148_v2, %s1723_s24  ;;  %v2342_v21 = vmul.f32 %v753_v38, %v2194_v18  ;;  %v2345_v36 = vmul.f32 %v842_v44, %v2205_v24  ;;  %v2348_v59 = vmul.f32 %v752_v34, %v2216_v31  ;;  %v813_v32 = vsel %vm811_vm0, %v808_v45, %v810_v41  ;;  %p1531_p13 = pneg %p1530_p7 }
  0xd7   : > { %634 = vrot.lane.b32.xlu0 %v2140_v0, %s1723_s24  ;;  %v2357_v33 = vmul.f32 %v841_v26, %v2194_v18  ;;  %v2360_v47 = vmul.f32 %v840_v56, %v2216_v31  ;;  %v736_v38 = vrot.slane %v520_v10, %v735_v48  ;;  %v740_v34 = vrot.slane %v520_v10, %v739_v39 }
  0xd8   : > { %v2367_v44 = vmul.f32 %v751_v62, %v2214_v30  ;;  %vm714_vm5 = vcmp.eq.s32.totalorder %v495_v63, 31  ;;  %v730_v41 = vsel %vm723_vm1, %v721_v22, %v715_v16  ;;  %v731_v48 = vsel %vm723_vm1, %v722_v40, %v716_v35 }
  0xd9   : > { %v2383_v17 = vmul.f32 %v839_v11, %v2214_v30  ;;  %v846_v26 = vsub.f32 1.0, %v813_v32  ;;  %v2386_v56 = vmul.f32 %v845_v19, %v2236_v46  ;;  %v2391_v52 = vstv %s904_s16  ;;  %s1534_s16 = scalar_lea.vmem %s1533_s21, 2048 }
  0xda   : > { %640 = vrot.lane.b32.xlu1 %v2156_v4, %s1723_s24  ;;  %v749_v11 = vsel %vm714_vm5, %v736_v38, %v730_v41  ;;  %v750_v32 = vsel %vm714_vm5, %v740_v34, %v731_v48  ;;  %v725_v63 = vsel %vm723_vm1, %v720_v42, %v722_v40  ;;  %v814_v35 = vsel %vm811_vm0, %v805_v27, %v807_v15  ;;  %p1536_p3 = scmp.lt.s32.totalorder %s1534_s16, %s1528_s23 }
  0xdb   : > { %638 = vrot.lane.b32.xlu0 %v2159_v5, %s1723_s24  ;;  %v2403_v29 = vmul.f32 %v846_v26, %v2247_v51  ;;  %v757_v41 = vsub.f32 1.0, %v749_v11  ;;  %v758_v48 = vsub.f32 1.0, %v750_v32  ;;  %v724_v26 = vsel %vm723_vm1, %v719_v14, %v721_v22 }
  0xdc   : > { %v755_v39 = vsub.f32 1.0, %v724_v26  ;;  %v843_v12 = vsub.f32 1.0, %v814_v35  ;;  %vm646_vm6 = vcmp.lt.s32.totalorder %v2180_v9, 1  ;;  %vm628_vm7 = vcmp.eq.s32.totalorder %v2180_v9, 0  ;;  %p1537_p5 = por %p1536_p3, %p1535_p6 }
  0xdd   : > { %v2447_v8 = vmul.f32 %v758_v48, %v2247_v51  ;;  %v2459_v48 = vmul.f32 %v757_v41, %v2236_v46  ;;  %v3169_v13 = vsub.f32 1.0, %v2328_v61 }
  0xde   : > { %644 = vrot.lane.b32.xlu1 %v2164_v6, %s1723_s24  ;;  %p1538_p12 = pnand %p1537_p5, %p1531_p13 }
  0xdf   : > { %642 = vrot.lane.b32.xlu0 %v2167_v7, %s1723_s24  ;;  %s2777_s24 = scalar_lea.vmem [#allocation14], %s2102_s1  ;;  %s1240_s1 = sshll.u32 %s2099_s20, 4 }
  0xe0   : > { %s2909_s19 = scalar_lea.vmem [#allocation12], %s1240_s1  ;;  %s1002_s26 = sshll.u32 %s2777_s24, 4  ;;  %s2972_s26 = int_to_ptr.vmem [resolvable:$true] %s1002_s26 }
  0xe1   : > { %s988_s22 = sshll.u32 %s2909_s19, 4  ;;  %s2959_s22 = int_to_ptr.vmem [resolvable:$true] %s988_s22 }
 0x134   : > { %v2338_v25 = vpop.permute.xlu1 %551 }
 0x135   : > { %v548_v28 = vpop.permute.xlu0 %547 }
 0x138   : > { %v554_v62 = vpop.permute.xlu1 %553 }
 0x139   : > { %v550_v10 = vpop.permute.xlu0 %549 }
 0x13c   : > { %v558_v38 = vpop.permute.xlu1 %557 }
 0x13d   : > { %v556_v34 = vpop.permute.xlu0 %555  ;;  %v565_v40 = vsel %vm563_vm3, %v550_v10, %v558_v38  ;;  %v569_v42 = vsel %vm563_vm3, %v558_v38, %v550_v10  ;;  %v3146_v10 = vrot.slane %v2156_v4, 7 }
 0x13e   : > { %v564_v11 = vsel %vm563_vm3, %v548_v28, %v556_v34  ;;  %v568_v32 = vsel %vm563_vm3, %v556_v34, %v548_v28  ;;  %v575_v14 = vsel %vm546_vm4, %v2156_v4, %v569_v42  ;;  %v582_v22 = vsub.f32 1.0, %v565_v40 }
 0x13f   : > { %v573_v15 = vsel %vm546_vm4, %v2159_v5, %v568_v32  ;;  %v580_v27 = vsub.f32 1.0, %v564_v11  ;;  %v583_v16 = vsub.f32 1.0, %v575_v14  ;;  %v815_v28 = vsel %vm811_vm0, %v3146_v10, %v808_v45 }
 0x140   : > { %v581_v57 = vsub.f32 1.0, %v573_v15  ;;  %v590_v38 = vmul.f32 %v582_v22, %v2194_v18  ;;  %v562_v40 = vpop.permute.xlu1 %561  ;;  %v756_v5 = vsub.f32 1.0, %v725_v63  ;;  %v844_v63 = vsub.f32 1.0, %v815_v28 }
 0x141   : > { %v588_v34 = vmul.f32 %v580_v27, %v2214_v30  ;;  %v560_v42 = vpop.permute.xlu0 %559  ;;  %v591_v11 = vmul.f32 %v583_v16, %v2205_v24  ;;  %v567_v26 = vsel %vm563_vm3, %v554_v62, %v562_v40  ;;  %v571_v4 = vsel %vm563_vm3, %v562_v40, %v554_v62 }
 0x142   : > { %v579_v45 = vsel %vm546_vm4, %v2164_v6, %v571_v4  ;;  %v586_v32 = vsub.f32 1.0, %v567_v26  ;;  %v598_v14 = vsub.f32 1.0, %v590_v38  ;;  %v589_v16 = vmul.f32 %v581_v57, %v2216_v31 }
 0x143   : > { %v587_v22 = vsub.f32 1.0, %v579_v45  ;;  %v2464_v62 = vmul.f32 %v755_v39, %v2258_v58  ;;  %v596_v35 = vsub.f32 1.0, %v588_v34  ;;  %v566_v6 = vsel %vm563_vm3, %v2338_v25, %v560_v42 }
 0x144   : > { %v570_v41 = vsel %vm563_vm3, %v560_v42, %v2338_v25  ;;  %v633_v15 = vpop.permute.xlu1 %632  ;;  %v2473_v10 = vmul.f32 %v756_v5, %v2265_v60  ;;  %v599_v57 = vsub.f32 1.0, %v591_v11  ;;  %v594_v28 = vmul.f32 %v586_v32, %v2236_v46 }
 0x145   : > { %3147 = vst [vmem:[#allocation28_spill] sm:$0xff] %v2464_v62  ;;  %v631_v27 = vpop.permute.xlu0 %630  ;;  %v2478_v38 = vmul.f32 %v843_v12, %v2258_v58  ;;  %v595_v34 = vmul.f32 %v587_v22, %v2247_v51  ;;  %v2484_v25 = vmul.f32 %v844_v63, %v2265_v60  ;;  %v3150_v42 = vsub.f32 1.0, %v2224_v37 }
 0x146   : > { %v597_v11 = vsub.f32 1.0, %v589_v16  ;;  %v577_v4 = vsel %vm546_vm4, %v2167_v7, %v570_v41  ;;  %v584_v12 = vsub.f32 1.0, %v566_v6  ;;  %v3153_v45 = vsub.f32 1.0, %v2245_v50 }
 0x147   : > { %3148 = vst [vmem:[#allocation29_spill] sm:$0xff] %v2478_v38  ;;  %3149 = vst [vmem:[#allocation30_spill] sm:$0xff] %v2484_v25  ;;  %vm2488_vm8 = vcmp.lt.f32.partialorder %v598_v14, %v3150_v42  ;;  %v585_v63 = vsub.f32 1.0, %v577_v4  ;;  %v3156_v16 = vsub.f32 1.0, %v2233_v43  ;;  %v602_v7 = vsub.f32 1.0, %v594_v28 }
 0x148   : > { %vm2497_vm9 = vcmp.lt.f32.partialorder %v596_v35, %v3153_v45  ;;  %v637_v22 = vpop.permute.xlu1 %636  ;;  %v592_v6 = vmul.f32 %v584_v12, %v2258_v58  ;;  %v3159_v4 = vmov %v3150_v42  ;;  %v603_v40 = vsub.f32 1.0, %v595_v34 }
 0x149   : > { %v2501_v39 = vpop.permute.xlu0 %634  ;;  %vm2507_vm10 = vcmp.lt.f32.partialorder %v599_v57, %v3156_v16  ;;  %v614_v45 = vsel %vm2488_vm8, %v598_v14, %v3159_v4  ;;  %v593_v42 = vmul.f32 %v585_v63, %v2265_v60  ;;  %v2522_v16 = vsel %vm2488_vm8, 1, %v3096_v53 }
 0x14a   : > { %v3160_v28 = vsub.f32 1.0, %v2242_v49  ;;  %v3163_v37 = vsub.f32 1.0, %v2245_v50  ;;  %v600_v34 = vsub.f32 1.0, %v592_v6  ;;  %v2537_v63 = vsel %vm2497_vm9, 1, %v3096_v53 }
 0x14b   : > { %v601_v5 = vsub.f32 1.0, %v593_v42  ;;  %v3164_v41 = vsub.f32 1.0, %v2233_v43  ;;  %v2546_v50 = vsel %vm2507_vm10, 1, %v3096_v53  ;;  %v3174_v25 = vmov 0  }
 0x14c   : > { %vm2526_vm11 = vcmp.lt.f32.partialorder %v597_v11, %v3160_v28  ;;  %v612_v14 = vsel %vm2497_vm9, %v596_v35, %v3163_v37  ;;  %v641_v4 = vpop.permute.xlu1 %640  ;;  %v3165_v35 = vsub.f32 1.0, %v2295_v20  ;;  %vm2564_vm14 = vcmp.lt.f32.partialorder %v600_v34, %v3169_v13 }
 0x14d   : > { %v615_v28 = vsel %vm2507_vm10, %v599_v57, %v3164_v41  ;;  %v639_v26 = vpop.permute.xlu0 %638  ;;  %v648_v32 = vsel %vm646_vm6, %v633_v15, %v641_v4  ;;  %v652_v42 = vsel %vm646_vm6, %v641_v4, %v633_v15  ;;  %v3166_v57 = vsub.f32 1.0, %v2323_v54 }
 0x14e   : > { %vm610_vm12 = vcmp.lt.f32.partialorder %v602_v7, %v3165_v35  ;;  %v647_v43 = vsel %vm646_vm6, %v631_v27, %v639_v26  ;;  %v657_v37 = vsel %vm628_vm7, %v2151_v3, %v652_v42  ;;  %v3172_v15 = vsub.f32 1.0, %v2242_v49 }
 0x14f   : > { %vm2558_vm13 = vcmp.lt.f32.partialorder %v603_v40, %v3166_v57  ;;  %v665_v35 = vsub.f32 1.0, %v657_v37  ;;  %v666_v57 = vsub.f32 1.0, %v648_v32  ;;  %v651_v19 = vsel %vm646_vm6, %v639_v26, %v631_v27 }
 0x150   : > { %v613_v4 = vsel %vm2526_vm11, %v597_v11, %v3172_v15  ;;  %v664_v53 = vsub.f32 1.0, %v647_v43  ;;  %v3173_v13 = vsub.f32 1.0, %v2295_v20  ;;  %v2582_v62 = vsel %vm610_vm12, 1, %v3174_v25  ;;  %v645_v32 = vpop.permute.xlu1 %644 }
 0x151   : > { %v3175_v3 = vsub.f32 1.0, %v2333_v23  ;;  %v655_v11 = vsel %vm628_vm7, %v2143_v1, %v651_v19  ;;  %v673_v27 = vmul.f32 %v665_v35, %v2194_v18  ;;  %v674_v26 = vmul.f32 %v666_v57, %v2205_v24 }
 0x152   : > { %v2579_v38 = vsel %vm610_vm12, %v602_v7, %v3173_v13  ;;  %v663_v20 = vsub.f32 1.0, %v655_v11  ;;  %v672_v7 = vmul.f32 %v664_v53, %v2216_v31  ;;  %v3178_v42 = vsub.f32 1.0, %v2328_v61  ;;  %v643_v31 = vpop.permute.xlu0 %642 }
 0x153   : > { %vm2586_vm15 = vcmp.lt.f32.partialorder %v601_v5, %v3175_v3  ;;  %v2605_v37 = vsel %vm2526_vm11, 1, %v3174_v25  ;;  %v3179_v1 = vsub.f32 1.0, %v2323_v54  ;;  %v2616_v24 = vsel %vm2558_vm13, 1, %v3174_v25 }
 0x154   : > { %v2600_v43 = vsel %vm2564_vm14, %v600_v34, %v3178_v42  ;;  %v681_v53 = vsub.f32 1.0, %v673_v27  ;;  %v682_v61 = vsub.f32 1.0, %v674_v26  ;;  %v671_v19 = vmul.f32 %v663_v20, %v2214_v30 }
 0x155   : > { %v2611_v18 = vsel %vm2558_vm13, %v603_v40, %v3179_v1  ;;  %v680_v34 = vsub.f32 1.0, %v672_v7  ;;  %v2622_v12 = vsel %vm2564_vm14, 1, %v3174_v25  ;;  %v2626_v54 = vsel %vm646_vm6, %v637_v22, %v645_v32 }
 0x156   : > { %v654_v40 = vsel %vm646_vm6, %v645_v32, %v637_v22  ;;  %v3180_v6 = vmov %v3175_v3  ;;  %vm2636_vm0 = vcmp.lt.f32.partialorder %v681_v53, %v614_v45  ;;  %vm2640_vm1 = vcmp.lt.f32.partialorder %v682_v61, %v615_v28 }
 0x157   : > { %v2634_v15 = vsel %vm2586_vm15, %v601_v5, %v3180_v6  ;;  %v679_v35 = vsub.f32 1.0, %v671_v19  ;;  %v653_v57 = vsel %vm646_vm6, %v643_v31, %v2501_v39  ;;  %v697_v23 = vsel %vm2636_vm0, %v681_v53, %v614_v45 }
 0x158   : > { %v698_v22 = vsel %vm2640_vm1, %v682_v61, %v615_v28  ;;  %vm2651_vm2 = vcmp.lt.f32.partialorder %v680_v34, %v613_v4  ;;  %v649_v13 = vsel %vm646_vm6, %v2501_v39, %v643_v31  ;;  %v3187_v3 = vsub.f32 1.0, %v2342_v21 }
 0x159   : > { %v3190_v27 = vsub.f32 1.0, %v2336_v55  ;;  %vm2670_vm5 = vcmp.lt.f32.partialorder %v679_v35, %v612_v14  ;;  %v661_v39 = vsel %vm628_vm7, %v2148_v2, %v654_v40  ;;  %v670_v42 = vsub.f32 1.0, %v2626_v54 }
 0x15a   : > { %vm2660_vm3 = vcmp.lt.f32.partialorder %v3187_v3, %v697_v23  ;;  %v3195_v26 = vmov %v3187_v3  ;;  %v659_v1 = vsel %vm628_vm7, %v2140_v0, %v653_v57  ;;  %v3197_v31 = vsub.f32 1.0, %v2357_v33 }
 0x15b   : > { %vm2666_vm4 = vcmp.lt.f32.partialorder %v3190_v27, %v698_v22  ;;  %v785_v20 = vsel %vm2660_vm3, %v3195_v26, %v697_v23  ;;  %v3196_v7 = vmov %v3190_v27  ;;  %v3200_v21 = vsub.f32 1.0, %v2345_v36 }
 0x15c   : > { %v786_v32 = vsel %vm2666_vm4, %v3196_v7, %v698_v22  ;;  %vm2691_vm6 = vcmp.lt.f32.partialorder %v3197_v31, %v785_v20  ;;  %v695_v55 = vsel %vm2670_vm5, %v679_v35, %v612_v14  ;;  %v696_v61 = vsel %vm2651_vm2, %v680_v34, %v613_v4 }
 0x15d   : > { %vm2697_vm8 = vcmp.lt.f32.partialorder %v3200_v21, %v786_v32  ;;  %v705_v0 = vsel %vm2636_vm0, 2, %v2522_v16  ;;  %v3203_v9 = vmov %v3197_v31  ;;  %v3204_v54 = vmov %v3200_v21 }
 0x15e   : > { %v873_v19 = vsel %vm2691_vm6, %v3203_v9, %v785_v20  ;;  %v874_v40 = vsel %vm2697_vm8, %v3204_v54, %v786_v32  ;;  %v668_v6 = vsub.f32 1.0, %v649_v13  ;;  %v706_v14 = vsel %vm2640_vm1, 2, %v2546_v50 }
 0x15f   : > { %890 = vst [vmem:[%s2720_s8 + $0x10] sm:$0xff] %v873_v19  ;;  %891 = vst [vmem:[%s2720_s8 + $0x18] sm:$0xff] %v874_v40  ;;  %v907_v33 = vsub.f32 1.0, %v873_v19  ;;  %v908_v16 = vsub.f32 1.0, %v874_v40  ;;  %v703_v36 = vsel %vm2670_vm5, 2, %v2537_v63  ;;  %v924_v4 = vmul.f32 1440.0, %v873_v19 }
 0x160   : > { %v925_v34 = vmul.f32 1440.0, %v874_v40  ;;  %v3205_v30 = vsub.f32 1.0, %v2367_v44  ;;  %v3206_v41 = vsub.f32 1.0, %v2348_v59  ;;  %v793_v3 = vsel %vm2660_vm3, 3, %v705_v0 }
 0x161   : > { %v916_v35 = vmul.f32 %v2391_v52, %v907_v33  ;;  %v917_v57 = vmul.f32 %v2391_v52, %v908_v16  ;;  %v3211_v27 = vsub.f32 1.0, %v2383_v17  ;;  %v3214_v26 = vsub.f32 1.0, %v2360_v47 }
 0x162   : > { %vm775_vm7 = vcmp.lt.f32.partialorder %v3205_v30, %v695_v55  ;;  %vm2731_vm9 = vcmp.lt.f32.partialorder %v3206_v41, %v696_v61  ;;  %v3209_v23 = vmov %v3205_v30  ;;  %v3210_v22 = vmov %v3206_v41 }
 0x163   : > { %v783_v63 = vsel %vm775_vm7, %v3209_v23, %v695_v55  ;;  %v784_v13 = vsel %vm2731_vm9, %v3210_v22, %v696_v61  ;;  %v669_v59 = vsub.f32 1.0, %v661_v39  ;;  %v932_v20 = vadd.f32 %v924_v4, %v916_v35 }
 0x164   : > { %vm2747_vm10 = vcmp.lt.f32.partialorder %v3211_v27, %v783_v63  ;;  %vm2753_vm11 = vcmp.lt.f32.partialorder %v3214_v26, %v784_v13  ;;  %v933_v7 = vadd.f32 %v925_v34, %v917_v57  ;;  %v3217_v32 = vmov %v3211_v27 }
 0x165   : > { %v871_v11 = vsel %vm2747_vm10, %v3217_v32, %v783_v63  ;;  %v3218_v31 = vmov %v3214_v26  ;;  %v704_v55 = vsel %vm2651_vm2, 2, %v2605_v37  ;;  %v791_v61 = vsel %vm775_vm7, 3, %v703_v36  ;;  %940 = vst [vmem:[%s2777_s24 + $0x10] sm:$0xff] %v932_v20 }
 0x166   : > { %v872_v21 = vsel %vm2753_vm11, %v3218_v31, %v784_v13  ;;  %888 = vst [vmem:[%s2720_s8] sm:$0xff] %v871_v11  ;;  %v905_v39 = vsub.f32 1.0, %v871_v11  ;;  %v2772_v17 = vsel %vm2666_vm4, 3, %v706_v14  ;;  %v881_v9 = vsel %vm2691_vm6, 4, %v793_v3  ;;  %941 = vst [vmem:[%s2777_s24 + $0x18] sm:$0xff] %v933_v7 }
 0x167   : > { %889 = vst [vmem:[%s2720_s8 + $0x8] sm:$0xff] %v872_v21  ;;  %v906_v0 = vsub.f32 1.0, %v872_v21  ;;  %v922_v47 = vmul.f32 1440.0, %v871_v11  ;;  %v923_v37 = vmul.f32 1440.0, %v872_v21  ;;  %v677_v54 = vmul.f32 %v669_v59, %v2236_v46 }
 0x168   : > { %v914_v5 = vmul.f32 %v2391_v52, %v905_v39  ;;  %v678_v45 = vmul.f32 %v670_v42, %v2247_v51  ;;  %v2787_v2 = vsel %vm2731_vm9, 3, %v704_v55  ;;  %v879_v40 = vsel %vm2747_vm10, 4, %v791_v61 }
 0x169   : > { %v915_v19 = vmul.f32 %v2391_v52, %v906_v0  ;;  %v667_v14 = vsub.f32 1.0, %v659_v1  ;;  %v676_v33 = vmul.f32 %v668_v6, %v2265_v60  ;;  %v685_v4 = vsub.f32 1.0, %v677_v54  ;;  %v3236_v0 = vld [vmem:[#allocation28_spill] sm:$0xff]  ;;  %v3240_v54 = vld [vmem:[#allocation30_spill] sm:$0xff] }
 0x16a   : > { %v930_v16 = vadd.f32 %v922_v47, %v914_v5  ;;  %v686_v34 = vsub.f32 1.0, %v678_v45  ;;  %v882_v46 = vsel %vm2697_vm8, 4, %v2772_v17  ;;  %v625_v51 = vsel %vm2586_vm15, 1, %v3174_v25 }
 0x16b   : > { %v931_v36 = vadd.f32 %v923_v37, %v915_v19  ;;  %v675_v42 = vmul.f32 %v667_v14, %v2258_v58  ;;  %v684_v30 = vsub.f32 1.0, %v676_v33  ;;  %v880_v1 = vsel %vm2753_vm11, 4, %v2787_v2  ;;  %v3244_v14 = vld [vmem:[#allocation29_spill] sm:$0xff] }
 0x16c   : > { %v2802_v60 = vpack.c.b16 %v881_v9, %v879_v40  ;;  %938 = vst [vmem:[%s2777_s24] sm:$0xff] %v930_v16  ;;  %vm693_vm12 = vcmp.lt.f32.partialorder %v685_v4, %v2579_v38  ;;  %vm694_vm13 = vcmp.lt.f32.partialorder %v686_v34, %v2611_v18  ;;  %v3219_v41 = vsub.f32 1.0, %v2459_v48 }
 0x16d   : > { %939 = vst [vmem:[%s2777_s24 + $0x8] sm:$0xff] %v931_v36  ;;  %v701_v6 = vsel %vm693_vm12, %v685_v4, %v2579_v38  ;;  %v702_v49 = vsel %vm694_vm13, %v686_v34, %v2611_v18  ;;  %v709_v25 = vsel %vm693_vm12, 2, %v2582_v62  ;;  %v710_v58 = vsel %vm694_vm13, 2, %v2616_v24 }
 0x16e   : > { %vm781_vm14 = vcmp.lt.f32.partialorder %v3219_v41, %v701_v6  ;;  %v3220_v50 = vsub.f32 1.0, %v2447_v8  ;;  %v683_v35 = vsub.f32 1.0, %v675_v42  ;;  %vm2817_vm0 = vcmp.lt.f32.partialorder %v684_v30, %v2634_v15 }
 0x16f   : > { %v3223_v38 = vmov %v3219_v41  ;;  %v797_v23 = vsel %vm781_vm14, 3, %v709_v25  ;;  %v3225_v22 = vsub.f32 1.0, %v2386_v56  ;;  %v3228_v3 = vsub.f32 1.0, %v2403_v29 }
 0x170   : > { %vm782_vm15 = vcmp.lt.f32.partialorder %v3220_v50, %v702_v49  ;;  %v789_v62 = vsel %vm781_vm14, %v3223_v38, %v701_v6  ;;  %v3224_v18 = vmov %v3220_v50  ;;  %vm2838_vm3 = vcmp.lt.f32.partialorder %v683_v35, %v2600_v43 }
 0x171   : > { %v790_v24 = vsel %vm782_vm15, %v3224_v18, %v702_v49  ;;  %v798_v63 = vsel %vm782_vm15, 3, %v710_v58  ;;  %vm2827_vm1 = vcmp.lt.f32.partialorder %v3225_v22, %v789_v62  ;;  %v700_v48 = vsel %vm2817_vm0, %v684_v30, %v2634_v15 }
 0x172   : > { %vm2833_vm2 = vcmp.lt.f32.partialorder %v3228_v3, %v790_v24  ;;  %v3233_v28 = vmov %v3225_v22  ;;  %v3234_v44 = vmov %v3228_v3  ;;  %v885_v20 = vsel %vm2827_vm1, 4, %v797_v23 }
 0x173   : > { %v877_v26 = vsel %vm2827_vm1, %v3233_v28, %v789_v62  ;;  %v878_v59 = vsel %vm2833_vm2, %v3234_v44, %v790_v24  ;;  %v886_v7 = vsel %vm2833_vm2, 4, %v798_v63  ;;  %v699_v29 = vsel %vm2838_vm3, %v683_v35, %v2600_v43 }
 0x174   : > { %894 = vst [vmem:[%s2720_s8 + $0x30] sm:$0xff] %v877_v26  ;;  %895 = vst [vmem:[%s2720_s8 + $0x38] sm:$0xff] %v878_v59  ;;  %v911_v15 = vsub.f32 1.0, %v877_v26  ;;  %v912_v32 = vsub.f32 1.0, %v878_v59  ;;  %v928_v56 = vmul.f32 1440.0, %v877_v26  ;;  %v929_v11 = vmul.f32 1440.0, %v878_v59 }
 0x175   : > { %v707_v31 = vsel %vm2838_vm3, 2, %v2622_v12  ;;  %v708_v21 = vsel %vm2817_vm0, 2, %v625_v51  ;;  %v3235_v55 = vsub.f32 1.0, %v2473_v10  ;;  %v3237_v9 = vsub.f32 1.0, %v3236_v0 }
 0x176   : > { %v920_v61 = vmul.f32 %v2391_v52, %v911_v15  ;;  %v921_v39 = vmul.f32 %v2391_v52, %v912_v32  ;;  %v3241_v45 = vsub.f32 1.0, %v3240_v54  ;;  %v3245_v33 = vsub.f32 1.0, %v3244_v14 }
 0x177   : > { %vm780_vm4 = vcmp.lt.f32.partialorder %v3235_v55, %v700_v48  ;;  %vm779_vm5 = vcmp.lt.f32.partialorder %v3237_v9, %v699_v29  ;;  %v3238_v43 = vmov %v3235_v55  ;;  %v3239_v37 = vmov %v3237_v9 }
 0x178   : > { %v788_v47 = vsel %vm780_vm4, %v3238_v43, %v700_v48  ;;  %v787_v12 = vsel %vm779_vm5, %v3239_v37, %v699_v29  ;;  %v795_v5 = vsel %vm779_vm5, 3, %v707_v31  ;;  %v796_v19 = vsel %vm780_vm4, 3, %v708_v21 }
 0x179   : > { %vm2882_vm6 = vcmp.lt.f32.partialorder %v3241_v45, %v788_v47  ;;  %v936_v10 = vadd.f32 %v928_v56, %v920_v61  ;;  %v937_v40 = vadd.f32 %v929_v11, %v921_v39  ;;  %vm867_vm7 = vcmp.lt.f32.partialorder %v3245_v33, %v787_v12 }
 0x17a   : > { %v3246_v16 = vmov %v3241_v45  ;;  %v3247_v4 = vmov %v3245_v33  ;;  %v883_v51 = vsel %vm867_vm7, 4, %v795_v5  ;;  %v884_v42 = vsel %vm2882_vm6, 4, %v796_v19 }
 0x17b   : > { %v876_v36 = vsel %vm2882_vm6, %v3246_v16, %v788_v47  ;;  %v875_v34 = vsel %vm867_vm7, %v3247_v4, %v787_v12  ;;  %v899_v6 = vpack.c.b16 %v882_v46, %v880_v1  ;;  %944 = vst [vmem:[%s2777_s24 + $0x30] sm:$0xff] %v936_v10  ;;  %945 = vst [vmem:[%s2777_s24 + $0x38] sm:$0xff] %v937_v40 }
 0x17c   : > { %893 = vst [vmem:[%s2720_s8 + $0x28] sm:$0xff] %v876_v36  ;;  %v910_v30 = vsub.f32 1.0, %v876_v36  ;;  %892 = vst [vmem:[%s2720_s8 + $0x20] sm:$0xff] %v875_v34  ;;  %v897_v49 = vpack.c.b16 %v885_v20, %v883_v51  ;;  %v900_v25 = vpack.c.b16 %v886_v7, %v884_v42  ;;  %v909_v58 = vsub.f32 1.0, %v875_v34 }
 0x17d   : > { %v927_v50 = vmul.f32 1440.0, %v876_v36 }
 0x17e   : > { %v919_v41 = vmul.f32 %v2391_v52, %v910_v30 }
 0x17f   : > { %1541 = shalt.err (!%p1538_p12)
}
 0x180   : > { %s1542_s8 = scalar_lea.hbm %s2891_s10, 1024  ;;  %s1546_s25 = scalar_lea.hbm %s3069_s5, 3072 }
 0x181   : > { %p1543_p1 = scmp.ne.s32.totalorder %s2891_s10, %s1542_s8  ;;  %p1547_p2 = scmp.lt.u32.totalorder %s2891_s10, %s3069_s5 }
 0x182   : > { %p1548_p9 = scmp.lt.u32.totalorder %s1546_s25, %s1542_s8  ;;  %p1550_p10 = scmp.lt.u32.totalorder %s1542_s8, %s2891_s10 }
 0x183   : > { %p1544_p8 = pnand %p1543_p1, %p3248_p0 }
 0x184   : > { %p1549_p11 = por %p1548_p9, %p1547_p2 }
 0x185   : > { %p1545_p4 = pneg %p1544_p8 }
 0x186   : > { %p1551_p7 = por %p1550_p10, %p1549_p11 }
 0x188   : > { %p1552_p13 = pnand %p1551_p7, %p1545_p4 }
 0x18a   : > { %1555 = shalt.err (!%p1552_p13)
}
 0x18b   : > { %s1726_s23 = smov 256   ;;  %s1727_s16 = smov 16   ;;  %v901_v53 = vpack.c.b8 %v900_v25, %v899_v6  ;;  %v918_v17 = vmul.f32 %v2391_v52, %v909_v58  ;;  %v926_v46 = vmul.f32 1440.0, %v875_v34  ;;  %v898_v1 = vpack.c.b8 %v897_v49, %v2802_v60 }
 0x18c   : > { %1290 = dma.vmem_to_hbm [thread:$0]  (%p3248_p0), %s2893_s29, 1024, %s2891_s10, %s947_s15, %s1726_s23, %s1726_s23, %s1727_s16   ;;  %v935_v35 = vadd.f32 %v927_v50, %v919_v41 }
 0x18d   : > { %s3249_s14 = sld [smem:[#allocation32_spill]]  ;;  %v934_v57 = vadd.f32 %v926_v46, %v918_v17  ;;  %902 = vst [vmem:[%s2909_s19] sm:$0xff] %v898_v1  ;;  %903 = vst [vmem:[%s2909_s19 + $0x8] sm:$0xff] %v901_v53  ;;  %s3250_s10 = sld [smem:[#allocation33_spill]] }
 0x18e   : > { %943 = vst [vmem:[%s2777_s24 + $0x28] sm:$0xff] %v935_v35  ;;  %s1556_s21 = scalar_lea.vmem %s2959_s22, 256  ;;  %s1728_s8 = smov [#allocation12]  }
 0x18f   : > { %p1557_p6 = scmp.ne.s32.totalorder %s2959_s22, %s1556_s21  ;;  %s1560_s19 = sshll.u32 %s1728_s8, 4  ;;  %s1561_s19 = int_to_ptr.vmem [resolvable:$false] %s1560_s19 }
 0x190   : > { %s1562_s1 = scalar_lea.vmem %s1561_s19, 512  ;;  %p1563_p12 = scmp.lt.s32.totalorder %s2959_s22, %s1561_s19 }
 0x191   : > { %p1558_p3 = pnand %p1557_p6, %p3248_p0  ;;  %p1564_p1 = scmp.lt.s32.totalorder %s1562_s1, %s1556_s21 }
 0x193   : > { %s2955_s25 = scalar_lea.hbm %s3249_s14, %s1277_s18  ;;  %s3251_s15 = smov %s3250_s10 }
 0x194   : > { %s2968_s7 = scalar_lea.hbm %s3250_s10, %s1276_s13  ;;  %s2977_s18 = scalar_lea.sflag [#allocation13], %s377_s17 }
 0x195   : > { %p1559_p5 = pneg %p1558_p3  ;;  %p1565_p8 = por %p1564_p1, %p1563_p12 }
 0x197   : > { %p1566_p4 = pnand %p1565_p8, %p1559_p5 }
 0x199   : > { %1569 = shalt.err (!%p1566_p4)
}
 0x19a   : > { %s1570_s12 = scalar_lea.hbm %s2955_s25, 256  ;;  %s1574_s20 = scalar_lea.hbm %s3249_s14, 768 }
 0x19b   : > { %p1571_p2 = scmp.ne.s32.totalorder %s2955_s25, %s1570_s12  ;;  %p1575_p10 = scmp.lt.u32.totalorder %s2955_s25, %s3249_s14 }
 0x19c   : > { %p1576_p7 = scmp.lt.u32.totalorder %s1574_s20, %s1570_s12  ;;  %p1578_p6 = scmp.lt.u32.totalorder %s1570_s12, %s2955_s25 }
 0x19d   : > { %p1572_p9 = pnand %p1571_p2, %p3248_p0 }
 0x19e   : > { %p1577_p13 = por %p1576_p7, %p1575_p10 }
 0x19f   : > { %p1573_p11 = pneg %p1572_p9 }
 0x1a0   : > { %p1579_p3 = por %p1578_p6, %p1577_p13 }
 0x1a2   : > { %p1580_p5 = pnand %p1579_p3, %p1573_p11 }
 0x1a4   : > { %1583 = shalt.err (!%p1580_p5)
}
 0x1a5   : > { %1291 = dma.vmem_to_hbm [thread:$0]  (%p3248_p0), %s2959_s22, 256, %s2955_s25, %s2977_s18   ;;  %942 = vst [vmem:[%s2777_s24 + $0x20] sm:$0xff] %v934_v57 }
 0x1a6   : > { %s1584_s21 = scalar_lea.vmem %s2972_s26, 1024  ;;  %s1729_s8 = smov [#allocation14]  }
 0x1a7   : > { %p1585_p12 = scmp.ne.s32.totalorder %s2972_s26, %s1584_s21  ;;  %s1588_s19 = sshll.u32 %s1729_s8, 4  ;;  %s1589_s19 = int_to_ptr.vmem [resolvable:$false] %s1588_s19 }
 0x1a8   : > { %s1590_s1 = scalar_lea.vmem %s1589_s19, 2048  ;;  %p1591_p4 = scmp.lt.s32.totalorder %s2972_s26, %s1589_s19 }
 0x1a9   : > { %p1586_p1 = pnand %p1585_p12, %p3248_p0  ;;  %p1592_p2 = scmp.lt.s32.totalorder %s1590_s1, %s1584_s21 }
 0x1ab   : > { %p1587_p8 = pneg %p1586_p1  ;;  %p1593_p9 = por %p1592_p2, %p1591_p4 }
 0x1ad   : > { %p1594_p11 = pnand %p1593_p9, %p1587_p8 }
 0x1af   : > { %1597 = shalt.err (!%p1594_p11)
}
 0x1b0   : > { %s1598_s24 = scalar_lea.hbm %s2968_s7, 1024  ;;  %s1602_s12 = scalar_lea.hbm %s3251_s15, 3072 }
 0x1b1   : > { %p1599_p10 = scmp.ne.s32.totalorder %s2968_s7, %s1598_s24  ;;  %p1603_p6 = scmp.lt.u32.totalorder %s2968_s7, %s3251_s15 }
 0x1b2   : > { %p1604_p3 = scmp.lt.u32.totalorder %s1602_s12, %s1598_s24  ;;  %p1606_p12 = scmp.lt.u32.totalorder %s1598_s24, %s2968_s7 }
 0x1b3   : > { %p1600_p7 = pnand %p1599_p10, %p3248_p0 }
 0x1b4   : > { %p1605_p5 = por %p1604_p3, %p1603_p6 }
 0x1b5   : > { %p1601_p13 = pneg %p1600_p7 }
 0x1b6   : > { %p1607_p1 = por %p1606_p12, %p1605_p5 }
 0x1b8   : > { %p1608_p8 = pnand %p1607_p1, %p1601_p13 }
 0x1ba   : > { %1611 = shalt.err (!%p1608_p8)
}
 0x1bb   : > { %1292 = dma.vmem_to_hbm [thread:$0]  (%p3248_p0), %s2972_s26, 1024, %s2968_s7, %s2977_s18, %s1726_s23, %s1726_s23, %s1727_s16  }
 0x1bc PF: > { %s3252_s20 = sld [smem:[#allocation22_spill]]  ;;  %s3253_s29 = sld [smem:[#allocation27_spill]] }
 0x1bd   : > { %p1320_p4 = scmp.ge.s32.totalorder %s1714_s11, 2 }
 0x1c2   : > { %s1017_s10 = sand.u32 1, %s3252_s20   ;;  %p3254_p2 = scmp.ne.s32.totalorder %s3253_s29, 0 }
 0x1c3   : > { %s1018_s21 = scalar_lea.sflag [#allocation5], %s1017_s10 }
 0x1c4   : > { %p1310_p9 = pnand %p1320_p4, %p3254_p2 }
 0x1c6   : > { %1669 = dma.done.wait (!%p1310_p9), %s1018_s21, 1024  }
 0x1c7   : > { %1671 = vsyncadd (!%p1310_p9), %s1018_s21, 4294966272  ;;  %s3255_s6 = sadd.s32 4294967294, %s1714_s11  }
 0x1c8   : > { %s1026_s8 = sand.u32 1, %s3255_s6  }
 0x1c9   : > { %s1027_s19 = scalar_lea.sflag [#allocation13], %s1026_s8 }
 0x1ca   : > { %1673 = dma.done.wait (!%p1310_p9), %s1027_s19, 1280  }
 0x1cb   : > { %1675 = vsyncadd (!%p1310_p9), %s1027_s19, 4294966016  ;;  %s3256_s11 = sld [smem:[#allocation25_spill]]  ;;  %s3257_s23 = sld [smem:[#allocation21_spill]] }
 0x1cc   : > { %s3258_s16 = sld [smem:[#allocation24_spill]]  ;;  %s3259_s7 = sld [smem:[#allocation23_spill]] }
 0x1cd   : > { %s3260_s10 = sld [smem:[#allocation26_spill]]  ;;  %s3261_s26 = smov %s1682_s27 }
 0x1ce   : > { %s3262_s27 = smov %s1686_s28  ;;  %s3263_s28 = smov %s2021_s4 }
 0x1cf   : > { %s3264_s29 = smov %s1694_s30  ;;  %s3267_s8 = smov %s1706_s9 }
 0x1d1   : > { %p31_p0 = scmp.ge.s32.totalorder %s3256_s11, 5   ;;  %s3265_s30 = smov %s3257_s23 }
 0x1d2   : > { %s3266_s4 = smov %s3258_s16  ;;  %s3268_s9 = smov %s3259_s7 }
 0x1d3   :  { %33 = sbr.rel (!%p31_p0) target bundleno = 19 (0x13), region = 156 }
 0x1da   :  { %1041 = vsyncpa [#allocation4], 1 }
 0x1db   :  { %1043 = vsyncpa [#allocation4 + $0x1], 1 }
 0x1dc   :  { %1044 = vsyncpa [#allocation7], 1 }
 0x1dd   :  { %1046 = vsyncpa [#allocation7 + $0x1], 1 }
 0x1de   :  { %1047 = vsyncpa [#allocation10], 1 }
 0x1df   :  { %1049 = vsyncpa [#allocation10 + $0x1], 1 }
 0x1e0   :  { %1050 = vsyncpa [#allocation5], 1 }
 0x1e1   :  { %1052 = vsyncpa [#allocation5 + $0x1], 1 }
 0x1e2   :  { %1053 = vsyncpa [#allocation13], 1 }
 0x1e3   :  { %1055 = vsyncpa [#allocation13 + $0x1], 1 }

</bundles_post_ra>
